<compile_context>
chip_gen: v6e
topology: v6e:2x2x1
jax: 0.10.0
libtpu: 0.0.40
codegen_flags: <defaults>
</compile_context>

<pallas_src>
import functools

import jax
import jax.numpy as jnp
from jax.experimental import pallas as pl
from jax.experimental.pallas import tpu as pltpu


def _round_up(x, m):
    return (x + m - 1) // m * m


def _vmem_capacity_bytes():
    try:
        return int(pltpu.get_tpu_info().vmem_capacity_bytes)
    except Exception:
        return 64 * 1024 * 1024  # conservative: v7x per-TC physical VMEM


def _kernel_vmem_bytes(chunk, bt, ip, hp):
    """Conservative estimate of in-kernel VMEM use (f32, double-buffered)."""
    f = 4
    weights = 2 * f * (ip * 3 * hp + hp * 3 * hp + 3 * hp + hp)
    tiles = f * 2 * chunk * bt * (ip + hp)            # x / out tiles (2x buffered)
    scratch = f * (chunk * bt * 3 * hp + bt * hp)     # gi chunk + carried h
    return weights + tiles + scratch


def _choose_chunk(T, bt, ip, hp, time_chunk, budget):
    # Largest chunk that fits the VMEM budget ...
    chunk = max(1, min(time_chunk, T))
    while chunk > 1 and _kernel_vmem_bytes(chunk, bt, ip, hp) > budget:
        chunk -= 1
    # ... preferring one that divides T exactly (no padded-tail recurrence).
    for c in range(chunk, 0, -1):
        if T % c == 0:
            if c >= max(1, chunk // 2):
                return c
            break
    return chunk  # fall back to a (correct but wasteful) padded tail


# -----------------------------------------------------------------------------
# Pallas kernel: one time-chunk of the GRU recurrence (input projection fused).
#   x_ref   : (Tc, Bt, Ip)   input chunk (padded, zeros in padding)
#   wih_ref : (Ip, 3*Hp)     input weights, pre-transposed & gate-padded
#   whh_ref : (Hp, 3*Hp)     recurrent weights, pre-transposed & gate-padded
#   bias_ref: (1, 3*Hp)      b_ih with b_hh of the r/z gates folded in
#   bhhn_ref: (1, Hp)        hidden bias of the candidate gate only
#   out_ref : (Tc, Bt, Hp)   hidden states for every step of the chunk
#   gi_ref  : (Tc, Bt, 3*Hp) VMEM scratch: per-chunk input projection
#   h_ref   : (Bt, Hp)       VMEM scratch: hidden state carried across chunks
# -----------------------------------------------------------------------------
def _gru_chunk_kernel(x_ref, wih_ref, whh_ref, bias_ref, bhhn_ref, out_ref,
                      gi_ref, h_ref, *, hidden_p, chunk, unroll):
    # Grid = (batch_tiles ["parallel"], time_chunks ["arbitrary"]).
    @pl.when(pl.program_id(1) == 0)
    def _():
        h_ref[...] = jnp.zeros_like(h_ref)

    bt = x_ref.shape[1]
    ip = x_ref.shape[2]
    hp = hidden_p

    # Fused input projection for the whole chunk: one tall MXU matmul
    #   (Tc*Bt, Ip) @ (Ip, 3*Hp) + folded bias  -> kept in VMEM scratch.
    x_flat = x_ref[...].reshape(chunk * bt, ip)
    gi = jnp.dot(x_flat, wih_ref[...],
                 preferred_element_type=jnp.float32) + bias_ref[...]
    gi_ref[...] = gi.reshape(chunk, bt, 3 * hp)

    whh = whh_ref[...]                                  # resident (Hp, 3*Hp)
    bhh_n = jnp.broadcast_to(bhhn_ref[...], (bt, hp))   # hoisted out of the loop

    def step(i, h):
        gi_i = gi_ref[i]                                # (Bt, 3*Hp)
        gh = jnp.dot(h, whh, preferred_element_type=jnp.float32)
        # PyTorch GRU gate order: r, z, n — slices are 128-lane aligned (Hp).
        r = jax.nn.sigmoid(gi_i[:, 0 * hp:1 * hp] + gh[:, 0 * hp:1 * hp])
        z = jax.nn.sigmoid(gi_i[:, 1 * hp:2 * hp] + gh[:, 1 * hp:2 * hp])
        n = jnp.tanh(gi_i[:, 2 * hp:3 * hp] + r * (gh[:, 2 * hp:3 * hp] + bhh_n))
        h_new = (1.0 - z) * n + z * h
        out_ref[i] = h_new
        return h_new

    h_ref[...] = jax.lax.fori_loop(0, chunk, step, h_ref[...], unroll=unroll)


# -----------------------------------------------------------------------------
# One GRU layer on already-padded activations.
#   x_pad: (T, Bp, Ip) f32, batch/lane padded with zeros.
#   Returns padded outputs (Tp, Bp, Hp); padded hidden lanes stay exactly zero.
# -----------------------------------------------------------------------------
def gru_layer_padded(x_pad, w_ih, w_hh, b_ih, b_hh, in_size, hidden, *,
                     time_chunk=64, batch_tiles=1):
    T, Bp, Ip = x_pad.shape
    H, I = hidden, in_size
    Hp = _round_up(H, 128)
    assert Ip == _round_up(I, 128) and Bp % 8 == 0

    # TODO(synk): set batch_tiles=2 on v7x (2 TensorCores/chip) for large
    # batches; at tiny batch a split only serializes the recurrence further.
    n_btiles = batch_tiles if (batch_tiles >= 1 and Bp % (8 * batch_tiles) == 0) else 1
    Bt = Bp // n_btiles

    cap = _vmem_capacity_bytes()
    chunk = _choose_chunk(T, Bt, Ip, Hp, time_chunk, budget=int(cap * 0.6))
    n_chunks = pl.cdiv(T, chunk)
    Tp = n_chunks * chunk
    if Tp != T:
        x_pad = jnp.pad(x_pad, ((0, Tp - T), (0, 0), (0, 0)))

    # ---- Weight-side padding: gi comes out of the matmul already lane-padded.
    wih_p = jnp.pad(w_ih.T.reshape(I, 3, H),
                    ((0, Ip - I), (0, 0), (0, Hp - H))).reshape(Ip, 3 * Hp)
    whh_p = jnp.pad(w_hh.T.reshape(H, 3, H),
                    ((0, Hp - H), (0, 0), (0, Hp - H))).reshape(Hp, 3 * Hp)
    # b_hh of the r/z gates folds into the input-side bias; the n-gate hidden
    # bias must stay inside the r * (.) term in the kernel.
    folded = b_ih + jnp.concatenate([b_hh[:2 * H], jnp.zeros((H,), jnp.float32)])
    bias_p = jnp.pad(folded.reshape(3, H), ((0, 0), (0, Hp - H))).reshape(1, 3 * Hp)
    bhhn_p = jnp.pad(b_hh[2 * H:], (0, Hp - H)).reshape(1, Hp)

    vmem_need = _kernel_vmem_bytes(chunk, Bt, Ip, Hp)
    vmem_limit = int(min(max(2 * vmem_need + (4 << 20), 32 << 20), int(cap * 0.9)))

    kernel = functools.partial(_gru_chunk_kernel, hidden_p=Hp, chunk=chunk,
                               unroll=min(8, chunk))
    out_pad = pl.pallas_call(
        kernel,
        out_shape=jax.ShapeDtypeStruct((Tp, Bp, Hp), jnp.float32),
        grid_spec=pltpu.PrefetchScalarGridSpec(
            num_scalar_prefetch=0,
            grid=(n_btiles, n_chunks),
            in_specs=[
                pl.BlockSpec((chunk, Bt, Ip), lambda b, c: (c, b, 0)),
                # Constant-index weight/bias specs: fetched once, stay resident.
                pl.BlockSpec((Ip, 3 * Hp), lambda b, c: (0, 0)),
                pl.BlockSpec((Hp, 3 * Hp), lambda b, c: (0, 0)),
                pl.BlockSpec((1, 3 * Hp), lambda b, c: (0, 0)),
                pl.BlockSpec((1, Hp), lambda b, c: (0, 0)),
            ],
            out_specs=pl.BlockSpec((chunk, Bt, Hp), lambda b, c: (c, b, 0)),
            scratch_shapes=[
                pltpu.VMEM((chunk, Bt, 3 * Hp), jnp.float32),   # gi chunk
                pltpu.VMEM((Bt, Hp), jnp.float32),              # carried h
            ],
        ),
        compiler_params=pltpu.CompilerParams(
            dimension_semantics=("parallel", "arbitrary"),
            vmem_limit_bytes=vmem_limit),
    )(x_pad, wih_p, whh_p, bias_p, bhhn_p)
    return out_pad


# -----------------------------------------------------------------------------
# Parameter init (PyTorch defaults: Embedding ~ N(0,1),
# GRU weights/biases ~ U(-1/sqrt(H), 1/sqrt(H)))
# -----------------------------------------------------------------------------
def init_params(key, vocab_size, embed_size, num_hiddens, num_layers):
    keys = jax.random.split(key, 1 + 4 * num_layers)
    params = {"embedding": jax.random.normal(keys[0], (vocab_size, embed_size),
                                             jnp.float32)}
    k = 1.0 / jnp.sqrt(jnp.float32(num_hiddens))
    layers = []
    for l in range(num_layers):
        in_size = embed_size if l == 0 else num_hiddens
        kw = keys[1 + 4 * l: 1 + 4 * (l + 1)]
        w_ih = jax.random.uniform(kw[0], (3 * num_hiddens, in_size),
                                  jnp.float32, -k, k)
        w_hh = jax.random.uniform(kw[1], (3 * num_hiddens, num_hiddens),
                                  jnp.float32, -k, k)
        b_ih = jax.random.uniform(kw[2], (3 * num_hiddens,), jnp.float32, -k, k)
        b_hh = jax.random.uniform(kw[3], (3 * num_hiddens,), jnp.float32, -k, k)
        layers.append({"w_ih": w_ih, "w_hh": w_hh, "b_ih": b_ih, "b_hh": b_hh})
    params["layers"] = layers
    return params


# -----------------------------------------------------------------------------
# Forward pass (mirrors Seq2SeqEncoder.forward)
# -----------------------------------------------------------------------------
def seq2seq_encoder_forward(params, X, num_hiddens, *, time_chunk=64):
    # X: (batch, seq) int tokens -> transpose to time-major (seq, batch)
    if X.ndim == 2:
        X = X.T
    T, B = X.shape
    H = num_hiddens

    emb = jnp.take(params["embedding"], X, axis=0)        # (T, B, E)
    E = emb.shape[-1]
    Ep = _round_up(E, 128)
    Bp = _round_up(B, 8)
    # Pad once; activations stay padded between layers, sliced once at the end.
    layer_in = jnp.pad(emb, ((0, 0), (0, Bp - B), (0, Ep - E)))

    # TODO(synk): nn.GRU inter-layer dropout (p=0.1) applies only in training
    # mode; this implements eval-mode (deterministic) semantics.
    h_lasts = []
    for li, lp in enumerate(params["layers"]):
        in_size = E if li == 0 else H
        out_pad = gru_layer_padded(layer_in, lp["w_ih"], lp["w_hh"],
                                   lp["b_ih"], lp["b_hh"], in_size, H,
                                   time_chunk=time_chunk)
        h_lasts.append(out_pad[T - 1, :B, :H])            # final hidden state
        layer_in = out_pad                                 # keep padded

    outputs = layer_in[:T, :B, :H]                         # (T, B, H)
    hidden_state = jnp.stack(h_lasts, axis=0)              # (num_layers, B, H)
    return outputs, hidden_state


# -----------------------------------------------------------------------------
# Pure-JAX reference (same math, lax.scan) for a correctness check.
# -----------------------------------------------------------------------------
def _ref_gru_layer(x_seq, w_ih, w_hh, b_ih, b_hh, hidden):
    hp = jax.lax.Precision.HIGHEST

    def step(h, x):
        gi = jnp.dot(x, w_ih.T, precision=hp) + b_ih
        gh = jnp.dot(h, w_hh.T, precision=hp) + b_hh
        i_r, i_z, i_n = jnp.split(gi, 3, axis=-1)
        h_r, h_z, h_n = jnp.split(gh, 3, axis=-1)
        r = jax.nn.sigmoid(i_r + h_r)
        z = jax.nn.sigmoid(i_z + h_z)
        n = jnp.tanh(i_n + r * h_n)
        h_new = (1.0 - z) * n + z * h
        return h_new, h_new

    h0 = jnp.zeros((x_seq.shape[1], hidden), jnp.float32)
    h_last, outs = jax.lax.scan(step, h0, x_seq)
    return outs, h_last


def _ref_forward(params, X, num_hiddens):
    if X.ndim == 2:
        X = X.T
    layer_in = jnp.take(params["embedding"], X, axis=0)
    h_lasts = []
    for lp in params["layers"]:
        out, h_last = _ref_gru_layer(layer_in, lp["w_ih"], lp["w_hh"],
                                     lp["b_ih"], lp["b_hh"], num_hiddens)
        h_lasts.append(h_last)
        layer_in = out
    return layer_in, jnp.stack(h_lasts, axis=0)


# -----------------------------------------------------------------------------
if __name__ == "__main__":
    vocab_size, embed_size, num_hiddens, num_layers = 50, 32, 32, 2
    batch, seq_len = 2, 8

    key = jax.random.PRNGKey(0)
    pkey, xkey = jax.random.split(key)
    params = init_params(pkey, vocab_size, embed_size, num_hiddens, num_layers)

    # tokens: (batch, seq) int32 — same as the PyTorch module's input
    X = jax.random.randint(xkey, (batch, seq_len), 0, vocab_size, jnp.int32)

    outputs, hidden_state = seq2seq_encoder_forward(params, X, num_hiddens)
    outputs = jax.block_until_ready(outputs)
    hidden_state = jax.block_until_ready(hidden_state)

    assert outputs.shape == (seq_len, batch, num_hiddens)
    assert hidden_state.shape == (num_layers, batch, num_hiddens)

    ref_out, ref_h = _ref_forward(params, X, num_hiddens)
    max_do = float(jnp.max(jnp.abs(outputs - ref_out)))
    max_dh = float(jnp.max(jnp.abs(hidden_state - ref_h)))
    assert jnp.allclose(outputs, ref_out, atol=1e-4, rtol=1e-4), max_do
    assert jnp.allclose(hidden_state, ref_h, atol=1e-4, rtol=1e-4), max_dh

    print("KERNEL_OK")
</pallas_src>

<mosaic_0001>
module attributes {stable_mosaic.version = 11 : i64} {
  func.func @_gru_chunk_kernel(%arg0: i32, %arg1: i32, %arg2: memref<8x8x128xf32, #tpu.memory_space<vmem>>, %arg3: memref<128x384xf32, #tpu.memory_space<vmem>>, %arg4: memref<128x384xf32, #tpu.memory_space<vmem>>, %arg5: memref<1x384xf32, #tpu.memory_space<vmem>>, %arg6: memref<1x128xf32, #tpu.memory_space<vmem>>, %arg7: memref<8x8x128xf32, #tpu.memory_space<vmem>>, %arg8: memref<8x8x384xf32, #tpu.memory_space<vmem>>, %arg9: memref<8x128xf32, #tpu.memory_space<vmem>>) attributes {dimension_semantics = [#tpu.dimension_semantics<parallel>, #tpu.dimension_semantics<arbitrary>], iteration_bounds = array<i64: 1, 1>, scalar_prefetch = 0 : i64, scratch_operands = 2 : i64, tpu.core_type = #tpu.core_type<tc>, window_params = [{transform_indices = @transform_0, window_bounds = array<i64: 8, 8, 128>}, {pipeline_mode = #tpu.pipeline_mode<synchronous>, transform_indices = @transform_1, window_bounds = array<i64: 128, 384>}, {pipeline_mode = #tpu.pipeline_mode<synchronous>, transform_indices = @transform_2, window_bounds = array<i64: 128, 384>}, {pipeline_mode = #tpu.pipeline_mode<synchronous>, transform_indices = @transform_3, window_bounds = array<i64: 1, 384>}, {pipeline_mode = #tpu.pipeline_mode<synchronous>, transform_indices = @transform_4, window_bounds = array<i64: 1, 128>}, {transform_indices = @transform_5, window_bounds = array<i64: 8, 8, 128>}]} {
    %c0_i32 = arith.constant 0 : i32
    %0 = arith.cmpi eq, %arg1, %c0_i32 : i32
    %1 = arith.extui %0 : i1 to i32
    %c0_i32_0 = arith.constant 0 : i32
    %2 = arith.cmpi ne, %1, %c0_i32_0 : i32
    scf.if %2 {
      %cst_83 = arith.constant 0.000000e+00 : f32
      %298 = vector.broadcast %cst_83 : f32 to vector<8x128xf32>
      %c0_84 = arith.constant 0 : index
      %c0_85 = arith.constant 0 : index
      %299 = vector.load %arg9[%c0_84, %c0_85] : memref<8x128xf32, #tpu.memory_space<vmem>>, vector<8x128xf32>
      tpu.vector_store %arg9[%c0_84, %c0_85], %298 {strides = array<i32>} : memref<8x128xf32, #tpu.memory_space<vmem>>, vector<8x128xf32>,
    } else {
    }
    %c0 = arith.constant 0 : index
    %c0_1 = arith.constant 0 : index
    %c0_2 = arith.constant 0 : index
    %3 = vector.load %arg2[%c0, %c0_1, %c0_2] : memref<8x8x128xf32, #tpu.memory_space<vmem>>, vector<8x8x128xf32>
    %4 = vector.shape_cast %3 : vector<8x8x128xf32> to vector<64x128xf32>
    %c0_3 = arith.constant 0 : index
    %c0_4 = arith.constant 0 : index
    %5 = vector.load %arg3[%c0_3, %c0_4] : memref<128x384xf32, #tpu.memory_space<vmem>>, vector<128x384xf32>
    %cst = arith.constant dense<0.000000e+00> : vector<64x384xf32>
    %6 = tpu.matmul %4, %5, %cst {dimension_numbers = #tpu.dot_dimension_numbers<[1], [0], [0], [1], [0, 0, 1, 1], [], []>} : vector<64x128xf32>, vector<128x384xf32>, vector<64x384xf32> -> vector<64x384xf32>
    %c0_5 = arith.constant 0 : index
    %c0_6 = arith.constant 0 : index
    %7 = vector.load %arg5[%c0_5, %c0_6] : memref<1x384xf32, #tpu.memory_space<vmem>>, vector<1x384xf32>
    %8 = vector.broadcast %7 : vector<1x384xf32> to vector<64x384xf32>
    %9 = arith.addf %6, %8 : vector<64x384xf32>
    %10 = vector.shape_cast %9 : vector<64x384xf32> to vector<8x8x384xf32>
    %c0_7 = arith.constant 0 : index
    %c0_8 = arith.constant 0 : index
    %c0_9 = arith.constant 0 : index
    %11 = vector.load %arg8[%c0_7, %c0_8, %c0_9] : memref<8x8x384xf32, #tpu.memory_space<vmem>>, vector<8x8x384xf32>
    tpu.vector_store %arg8[%c0_7, %c0_8, %c0_9], %10 {strides = array<i32>} : memref<8x8x384xf32, #tpu.memory_space<vmem>>, vector<8x8x384xf32>,
    %c0_10 = arith.constant 0 : index
    %c0_11 = arith.constant 0 : index
    %12 = vector.load %arg4[%c0_10, %c0_11] : memref<128x384xf32, #tpu.memory_space<vmem>>, vector<128x384xf32>
    %c0_12 = arith.constant 0 : index
    %c0_13 = arith.constant 0 : index
    %13 = vector.load %arg6[%c0_12, %c0_13] : memref<1x128xf32, #tpu.memory_space<vmem>>, vector<1x128xf32>
    %14 = vector.shape_cast %13 : vector<1x128xf32> to vector<1x128xf32>
    %15 = vector.broadcast %14 : vector<1x128xf32> to vector<8x128xf32>
    %c0_14 = arith.constant 0 : index
    %c0_15 = arith.constant 0 : index
    %16 = vector.load %arg9[%c0_14, %c0_15] : memref<8x128xf32, #tpu.memory_space<vmem>>, vector<8x128xf32>
    %c0_i32_16 = arith.constant 0 : i32
    %17 = arith.index_cast %c0_i32_16 : i32 to index
    %c0_17 = arith.constant 0 : index
    %c0_18 = arith.constant 0 : index
    %18 = vector.load %arg8[%17, %c0_17, %c0_18] : memref<8x8x384xf32, #tpu.memory_space<vmem>>, vector<1x8x384xf32>
    %19 = vector.shape_cast %18 : vector<1x8x384xf32> to vector<8x384xf32>
    %cst_19 = arith.constant dense<0.000000e+00> : vector<8x384xf32>
    %20 = tpu.matmul %16, %12, %cst_19 {dimension_numbers = #tpu.dot_dimension_numbers<[1], [0], [0], [1], [0, 0, 1, 1], [], []>} : vector<8x128xf32>, vector<128x384xf32>, vector<8x384xf32> -> vector<8x384xf32>
    %21 = vector.extract_strided_slice %19 {offsets = [0, 0], sizes = [8, 128], strides = [1, 1]} : vector<8x384xf32> to vector<8x128xf32>
    %22 = vector.extract_strided_slice %20 {offsets = [0, 0], sizes = [8, 128], strides = [1, 1]} : vector<8x384xf32> to vector<8x128xf32>
    %23 = arith.addf %21, %22 : vector<8x128xf32>
    %24 = arith.negf %23 : vector<8x128xf32>
    %25 = math.exp %24 : vector<8x128xf32>
    %cst_20 = arith.constant 1.000000e+00 : f32
    %26 = vector.broadcast %cst_20 : f32 to vector<8x128xf32>
    %27 = arith.addf %26, %25 : vector<8x128xf32>
    %28 = arith.divf %26, %27 : vector<8x128xf32>
    %29 = vector.extract_strided_slice %19 {offsets = [0, 128], sizes = [8, 128], strides = [1, 1]} : vector<8x384xf32> to vector<8x128xf32>
    %30 = vector.extract_strided_slice %20 {offsets = [0, 128], sizes = [8, 128], strides = [1, 1]} : vector<8x384xf32> to vector<8x128xf32>
    %31 = arith.addf %29, %30 : vector<8x128xf32>
    %32 = arith.negf %31 : vector<8x128xf32>
    %33 = math.exp %32 : vector<8x128xf32>
    %cst_21 = arith.constant 1.000000e+00 : f32
    %34 = vector.broadcast %cst_21 : f32 to vector<8x128xf32>
    %35 = arith.addf %34, %33 : vector<8x128xf32>
    %36 = arith.divf %34, %35 : vector<8x128xf32>
    %37 = vector.extract_strided_slice %19 {offsets = [0, 256], sizes = [8, 128], strides = [1, 1]} : vector<8x384xf32> to vector<8x128xf32>
    %38 = vector.extract_strided_slice %20 {offsets = [0, 256], sizes = [8, 128], strides = [1, 1]} : vector<8x384xf32> to vector<8x128xf32>
    %39 = arith.addf %38, %15 : vector<8x128xf32>
    %40 = arith.mulf %28, %39 : vector<8x128xf32>
    %41 = arith.addf %37, %40 : vector<8x128xf32>
    %42 = math.tanh %41 : vector<8x128xf32>
    %cst_22 = arith.constant 1.000000e+00 : f32
    %43 = vector.broadcast %cst_22 : f32 to vector<8x128xf32>
    %44 = arith.subf %43, %36 : vector<8x128xf32>
    %45 = arith.mulf %44, %42 : vector<8x128xf32>
    %46 = arith.mulf %36, %16 : vector<8x128xf32>
    %47 = arith.addf %45, %46 : vector<8x128xf32>
    %48 = arith.index_cast %c0_i32_16 : i32 to index
    %c0_23 = arith.constant 0 : index
    %c0_24 = arith.constant 0 : index
    %49 = vector.load %arg7[%48, %c0_23, %c0_24] : memref<8x8x128xf32, #tpu.memory_space<vmem>>, vector<1x8x128xf32>
    %50 = vector.shape_cast %49 : vector<1x8x128xf32> to vector<8x128xf32>
    %51 = vector.shape_cast %47 : vector<8x128xf32> to vector<1x8x128xf32>
    tpu.vector_store %arg7[%48, %c0_23, %c0_24], %51 {strides = array<i32>} : memref<8x8x128xf32, #tpu.memory_space<vmem>>, vector<1x8x128xf32>,
    %c1_i32 = arith.constant 1 : i32
    %52 = arith.index_cast %c1_i32 : i32 to index
    %c0_25 = arith.constant 0 : index
    %c0_26 = arith.constant 0 : index
    %53 = vector.load %arg8[%52, %c0_25, %c0_26] : memref<8x8x384xf32, #tpu.memory_space<vmem>>, vector<1x8x384xf32>
    %54 = vector.shape_cast %53 : vector<1x8x384xf32> to vector<8x384xf32>
    %cst_27 = arith.constant dense<0.000000e+00> : vector<8x384xf32>
    %55 = tpu.matmul %47, %12, %cst_27 {dimension_numbers = #tpu.dot_dimension_numbers<[1], [0], [0], [1], [0, 0, 1, 1], [], []>} : vector<8x128xf32>, vector<128x384xf32>, vector<8x384xf32> -> vector<8x384xf32>
    %56 = vector.extract_strided_slice %54 {offsets = [0, 0], sizes = [8, 128], strides = [1, 1]} : vector<8x384xf32> to vector<8x128xf32>
    %57 = vector.extract_strided_slice %55 {offsets = [0, 0], sizes = [8, 128], strides = [1, 1]} : vector<8x384xf32> to vector<8x128xf32>
    %58 = arith.addf %56, %57 : vector<8x128xf32>
    %59 = arith.negf %58 : vector<8x128xf32>
    %60 = math.exp %59 : vector<8x128xf32>
    %cst_28 = arith.constant 1.000000e+00 : f32
    %61 = vector.broadcast %cst_28 : f32 to vector<8x128xf32>
    %62 = arith.addf %61, %60 : vector<8x128xf32>
    %63 = arith.divf %61, %62 : vector<8x128xf32>
    %64 = vector.extract_strided_slice %54 {offsets = [0, 128], sizes = [8, 128], strides = [1, 1]} : vector<8x384xf32> to vector<8x128xf32>
    %65 = vector.extract_strided_slice %55 {offsets = [0, 128], sizes = [8, 128], strides = [1, 1]} : vector<8x384xf32> to vector<8x128xf32>
    %66 = arith.addf %64, %65 : vector<8x128xf32>
    %67 = arith.negf %66 : vector<8x128xf32>
    %68 = math.exp %67 : vector<8x128xf32>
    %cst_29 = arith.constant 1.000000e+00 : f32
    %69 = vector.broadcast %cst_29 : f32 to vector<8x128xf32>
    %70 = arith.addf %69, %68 : vector<8x128xf32>
    %71 = arith.divf %69, %70 : vector<8x128xf32>
    %72 = vector.extract_strided_slice %54 {offsets = [0, 256], sizes = [8, 128], strides = [1, 1]} : vector<8x384xf32> to vector<8x128xf32>
    %73 = vector.extract_strided_slice %55 {offsets = [0, 256], sizes = [8, 128], strides = [1, 1]} : vector<8x384xf32> to vector<8x128xf32>
    %74 = arith.addf %73, %15 : vector<8x128xf32>
    %75 = arith.mulf %63, %74 : vector<8x128xf32>
    %76 = arith.addf %72, %75 : vector<8x128xf32>
    %77 = math.tanh %76 : vector<8x128xf32>
    %cst_30 = arith.constant 1.000000e+00 : f32
    %78 = vector.broadcast %cst_30 : f32 to vector<8x128xf32>
    %79 = arith.subf %78, %71 : vector<8x128xf32>
    %80 = arith.mulf %79, %77 : vector<8x128xf32>
    %81 = arith.mulf %71, %47 : vector<8x128xf32>
    %82 = arith.addf %80, %81 : vector<8x128xf32>
    %83 = arith.index_cast %c1_i32 : i32 to index
    %c0_31 = arith.constant 0 : index
    %c0_32 = arith.constant 0 : index
    %84 = vector.load %arg7[%83, %c0_31, %c0_32] : memref<8x8x128xf32, #tpu.memory_space<vmem>>, vector<1x8x128xf32>
    %85 = vector.shape_cast %84 : vector<1x8x128xf32> to vector<8x128xf32>
    %86 = vector.shape_cast %82 : vector<8x128xf32> to vector<1x8x128xf32>
    tpu.vector_store %arg7[%83, %c0_31, %c0_32], %86 {strides = array<i32>} : memref<8x8x128xf32, #tpu.memory_space<vmem>>, vector<1x8x128xf32>,
    %c2_i32 = arith.constant 2 : i32
    %87 = arith.index_cast %c2_i32 : i32 to index
    %c0_33 = arith.constant 0 : index
    %c0_34 = arith.constant 0 : index
    %88 = vector.load %arg8[%87, %c0_33, %c0_34] : memref<8x8x384xf32, #tpu.memory_space<vmem>>, vector<1x8x384xf32>
    %89 = vector.shape_cast %88 : vector<1x8x384xf32> to vector<8x384xf32>
    %cst_35 = arith.constant dense<0.000000e+00> : vector<8x384xf32>
    %90 = tpu.matmul %82, %12, %cst_35 {dimension_numbers = #tpu.dot_dimension_numbers<[1], [0], [0], [1], [0, 0, 1, 1], [], []>} : vector<8x128xf32>, vector<128x384xf32>, vector<8x384xf32> -> vector<8x384xf32>
    %91 = vector.extract_strided_slice %89 {offsets = [0, 0], sizes = [8, 128], strides = [1, 1]} : vector<8x384xf32> to vector<8x128xf32>
    %92 = vector.extract_strided_slice %90 {offsets = [0, 0], sizes = [8, 128], strides = [1, 1]} : vector<8x384xf32> to vector<8x128xf32>
    %93 = arith.addf %91, %92 : vector<8x128xf32>
    %94 = arith.negf %93 : vector<8x128xf32>
    %95 = math.exp %94 : vector<8x128xf32>
    %cst_36 = arith.constant 1.000000e+00 : f32
    %96 = vector.broadcast %cst_36 : f32 to vector<8x128xf32>
    %97 = arith.addf %96, %95 : vector<8x128xf32>
    %98 = arith.divf %96, %97 : vector<8x128xf32>
    %99 = vector.extract_strided_slice %89 {offsets = [0, 128], sizes = [8, 128], strides = [1, 1]} : vector<8x384xf32> to vector<8x128xf32>
    %100 = vector.extract_strided_slice %90 {offsets = [0, 128], sizes = [8, 128], strides = [1, 1]} : vector<8x384xf32> to vector<8x128xf32>
    %101 = arith.addf %99, %100 : vector<8x128xf32>
    %102 = arith.negf %101 : vector<8x128xf32>
    %103 = math.exp %102 : vector<8x128xf32>
    %cst_37 = arith.constant 1.000000e+00 : f32
    %104 = vector.broadcast %cst_37 : f32 to vector<8x128xf32>
    %105 = arith.addf %104, %103 : vector<8x128xf32>
    %106 = arith.divf %104, %105 : vector<8x128xf32>
    %107 = vector.extract_strided_slice %89 {offsets = [0, 256], sizes = [8, 128], strides = [1, 1]} : vector<8x384xf32> to vector<8x128xf32>
    %108 = vector.extract_strided_slice %90 {offsets = [0, 256], sizes = [8, 128], strides = [1, 1]} : vector<8x384xf32> to vector<8x128xf32>
    %109 = arith.addf %108, %15 : vector<8x128xf32>
    %110 = arith.mulf %98, %109 : vector<8x128xf32>
    %111 = arith.addf %107, %110 : vector<8x128xf32>
    %112 = math.tanh %111 : vector<8x128xf32>
    %cst_38 = arith.constant 1.000000e+00 : f32
    %113 = vector.broadcast %cst_38 : f32 to vector<8x128xf32>
    %114 = arith.subf %113, %106 : vector<8x128xf32>
    %115 = arith.mulf %114, %112 : vector<8x128xf32>
    %116 = arith.mulf %106, %82 : vector<8x128xf32>
    %117 = arith.addf %115, %116 : vector<8x128xf32>
    %118 = arith.index_cast %c2_i32 : i32 to index
    %c0_39 = arith.constant 0 : index
    %c0_40 = arith.constant 0 : index
    %119 = vector.load %arg7[%118, %c0_39, %c0_40] : memref<8x8x128xf32, #tpu.memory_space<vmem>>, vector<1x8x128xf32>
    %120 = vector.shape_cast %119 : vector<1x8x128xf32> to vector<8x128xf32>
    %121 = vector.shape_cast %117 : vector<8x128xf32> to vector<1x8x128xf32>
    tpu.vector_store %arg7[%118, %c0_39, %c0_40], %121 {strides = array<i32>} : memref<8x8x128xf32, #tpu.memory_space<vmem>>, vector<1x8x128xf32>,
    %c3_i32 = arith.constant 3 : i32
    %122 = arith.index_cast %c3_i32 : i32 to index
    %c0_41 = arith.constant 0 : index
    %c0_42 = arith.constant 0 : index
    %123 = vector.load %arg8[%122, %c0_41, %c0_42] : memref<8x8x384xf32, #tpu.memory_space<vmem>>, vector<1x8x384xf32>
    %124 = vector.shape_cast %123 : vector<1x8x384xf32> to vector<8x384xf32>
    %cst_43 = arith.constant dense<0.000000e+00> : vector<8x384xf32>
    %125 = tpu.matmul %117, %12, %cst_43 {dimension_numbers = #tpu.dot_dimension_numbers<[1], [0], [0], [1], [0, 0, 1, 1], [], []>} : vector<8x128xf32>, vector<128x384xf32>, vector<8x384xf32> -> vector<8x384xf32>
    %126 = vector.extract_strided_slice %124 {offsets = [0, 0], sizes = [8, 128], strides = [1, 1]} : vector<8x384xf32> to vector<8x128xf32>
    %127 = vector.extract_strided_slice %125 {offsets = [0, 0], sizes = [8, 128], strides = [1, 1]} : vector<8x384xf32> to vector<8x128xf32>
    %128 = arith.addf %126, %127 : vector<8x128xf32>
    %129 = arith.negf %128 : vector<8x128xf32>
    %130 = math.exp %129 : vector<8x128xf32>
    %cst_44 = arith.constant 1.000000e+00 : f32
    %131 = vector.broadcast %cst_44 : f32 to vector<8x128xf32>
    %132 = arith.addf %131, %130 : vector<8x128xf32>
    %133 = arith.divf %131, %132 : vector<8x128xf32>
    %134 = vector.extract_strided_slice %124 {offsets = [0, 128], sizes = [8, 128], strides = [1, 1]} : vector<8x384xf32> to vector<8x128xf32>
    %135 = vector.extract_strided_slice %125 {offsets = [0, 128], sizes = [8, 128], strides = [1, 1]} : vector<8x384xf32> to vector<8x128xf32>
    %136 = arith.addf %134, %135 : vector<8x128xf32>
    %137 = arith.negf %136 : vector<8x128xf32>
    %138 = math.exp %137 : vector<8x128xf32>
    %cst_45 = arith.constant 1.000000e+00 : f32
    %139 = vector.broadcast %cst_45 : f32 to vector<8x128xf32>
    %140 = arith.addf %139, %138 : vector<8x128xf32>
    %141 = arith.divf %139, %140 : vector<8x128xf32>
    %142 = vector.extract_strided_slice %124 {offsets = [0, 256], sizes = [8, 128], strides = [1, 1]} : vector<8x384xf32> to vector<8x128xf32>
    %143 = vector.extract_strided_slice %125 {offsets = [0, 256], sizes = [8, 128], strides = [1, 1]} : vector<8x384xf32> to vector<8x128xf32>
    %144 = arith.addf %143, %15 : vector<8x128xf32>
    %145 = arith.mulf %133, %144 : vector<8x128xf32>
    %146 = arith.addf %142, %145 : vector<8x128xf32>
    %147 = math.tanh %146 : vector<8x128xf32>
    %cst_46 = arith.constant 1.000000e+00 : f32
    %148 = vector.broadcast %cst_46 : f32 to vector<8x128xf32>
    %149 = arith.subf %148, %141 : vector<8x128xf32>
    %150 = arith.mulf %149, %147 : vector<8x128xf32>
    %151 = arith.mulf %141, %117 : vector<8x128xf32>
    %152 = arith.addf %150, %151 : vector<8x128xf32>
    %153 = arith.index_cast %c3_i32 : i32 to index
    %c0_47 = arith.constant 0 : index
    %c0_48 = arith.constant 0 : index
    %154 = vector.load %arg7[%153, %c0_47, %c0_48] : memref<8x8x128xf32, #tpu.memory_space<vmem>>, vector<1x8x128xf32>
    %155 = vector.shape_cast %154 : vector<1x8x128xf32> to vector<8x128xf32>
    %156 = vector.shape_cast %152 : vector<8x128xf32> to vector<1x8x128xf32>
    tpu.vector_store %arg7[%153, %c0_47, %c0_48], %156 {strides = array<i32>} : memref<8x8x128xf32, #tpu.memory_space<vmem>>, vector<1x8x128xf32>,
    %c4_i32 = arith.constant 4 : i32
    %157 = arith.index_cast %c4_i32 : i32 to index
    %c0_49 = arith.constant 0 : index
    %c0_50 = arith.constant 0 : index
    %158 = vector.load %arg8[%157, %c0_49, %c0_50] : memref<8x8x384xf32, #tpu.memory_space<vmem>>, vector<1x8x384xf32>
    %159 = vector.shape_cast %158 : vector<1x8x384xf32> to vector<8x384xf32>
    %cst_51 = arith.constant dense<0.000000e+00> : vector<8x384xf32>
    %160 = tpu.matmul %152, %12, %cst_51 {dimension_numbers = #tpu.dot_dimension_numbers<[1], [0], [0], [1], [0, 0, 1, 1], [], []>} : vector<8x128xf32>, vector<128x384xf32>, vector<8x384xf32> -> vector<8x384xf32>
    %161 = vector.extract_strided_slice %159 {offsets = [0, 0], sizes = [8, 128], strides = [1, 1]} : vector<8x384xf32> to vector<8x128xf32>
    %162 = vector.extract_strided_slice %160 {offsets = [0, 0], sizes = [8, 128], strides = [1, 1]} : vector<8x384xf32> to vector<8x128xf32>
    %163 = arith.addf %161, %162 : vector<8x128xf32>
    %164 = arith.negf %163 : vector<8x128xf32>
    %165 = math.exp %164 : vector<8x128xf32>
    %cst_52 = arith.constant 1.000000e+00 : f32
    %166 = vector.broadcast %cst_52 : f32 to vector<8x128xf32>
    %167 = arith.addf %166, %165 : vector<8x128xf32>
    %168 = arith.divf %166, %167 : vector<8x128xf32>
    %169 = vector.extract_strided_slice %159 {offsets = [0, 128], sizes = [8, 128], strides = [1, 1]} : vector<8x384xf32> to vector<8x128xf32>
    %170 = vector.extract_strided_slice %160 {offsets = [0, 128], sizes = [8, 128], strides = [1, 1]} : vector<8x384xf32> to vector<8x128xf32>
    %171 = arith.addf %169, %170 : vector<8x128xf32>
    %172 = arith.negf %171 : vector<8x128xf32>
    %173 = math.exp %172 : vector<8x128xf32>
    %cst_53 = arith.constant 1.000000e+00 : f32
    %174 = vector.broadcast %cst_53 : f32 to vector<8x128xf32>
    %175 = arith.addf %174, %173 : vector<8x128xf32>
    %176 = arith.divf %174, %175 : vector<8x128xf32>
    %177 = vector.extract_strided_slice %159 {offsets = [0, 256], sizes = [8, 128], strides = [1, 1]} : vector<8x384xf32> to vector<8x128xf32>
    %178 = vector.extract_strided_slice %160 {offsets = [0, 256], sizes = [8, 128], strides = [1, 1]} : vector<8x384xf32> to vector<8x128xf32>
    %179 = arith.addf %178, %15 : vector<8x128xf32>
    %180 = arith.mulf %168, %179 : vector<8x128xf32>
    %181 = arith.addf %177, %180 : vector<8x128xf32>
    %182 = math.tanh %181 : vector<8x128xf32>
    %cst_54 = arith.constant 1.000000e+00 : f32
    %183 = vector.broadcast %cst_54 : f32 to vector<8x128xf32>
    %184 = arith.subf %183, %176 : vector<8x128xf32>
    %185 = arith.mulf %184, %182 : vector<8x128xf32>
    %186 = arith.mulf %176, %152 : vector<8x128xf32>
    %187 = arith.addf %185, %186 : vector<8x128xf32>
    %188 = arith.index_cast %c4_i32 : i32 to index
    %c0_55 = arith.constant 0 : index
    %c0_56 = arith.constant 0 : index
    %189 = vector.load %arg7[%188, %c0_55, %c0_56] : memref<8x8x128xf32, #tpu.memory_space<vmem>>, vector<1x8x128xf32>
    %190 = vector.shape_cast %189 : vector<1x8x128xf32> to vector<8x128xf32>
    %191 = vector.shape_cast %187 : vector<8x128xf32> to vector<1x8x128xf32>
    tpu.vector_store %arg7[%188, %c0_55, %c0_56], %191 {strides = array<i32>} : memref<8x8x128xf32, #tpu.memory_space<vmem>>, vector<1x8x128xf32>,
    %c5_i32 = arith.constant 5 : i32
    %192 = arith.index_cast %c5_i32 : i32 to index
    %c0_57 = arith.constant 0 : index
    %c0_58 = arith.constant 0 : index
    %193 = vector.load %arg8[%192, %c0_57, %c0_58] : memref<8x8x384xf32, #tpu.memory_space<vmem>>, vector<1x8x384xf32>
    %194 = vector.shape_cast %193 : vector<1x8x384xf32> to vector<8x384xf32>
    %cst_59 = arith.constant dense<0.000000e+00> : vector<8x384xf32>
    %195 = tpu.matmul %187, %12, %cst_59 {dimension_numbers = #tpu.dot_dimension_numbers<[1], [0], [0], [1], [0, 0, 1, 1], [], []>} : vector<8x128xf32>, vector<128x384xf32>, vector<8x384xf32> -> vector<8x384xf32>
    %196 = vector.extract_strided_slice %194 {offsets = [0, 0], sizes = [8, 128], strides = [1, 1]} : vector<8x384xf32> to vector<8x128xf32>
    %197 = vector.extract_strided_slice %195 {offsets = [0, 0], sizes = [8, 128], strides = [1, 1]} : vector<8x384xf32> to vector<8x128xf32>
    %198 = arith.addf %196, %197 : vector<8x128xf32>
    %199 = arith.negf %198 : vector<8x128xf32>
    %200 = math.exp %199 : vector<8x128xf32>
    %cst_60 = arith.constant 1.000000e+00 : f32
    %201 = vector.broadcast %cst_60 : f32 to vector<8x128xf32>
    %202 = arith.addf %201, %200 : vector<8x128xf32>
    %203 = arith.divf %201, %202 : vector<8x128xf32>
    %204 = vector.extract_strided_slice %194 {offsets = [0, 128], sizes = [8, 128], strides = [1, 1]} : vector<8x384xf32> to vector<8x128xf32>
    %205 = vector.extract_strided_slice %195 {offsets = [0, 128], sizes = [8, 128], strides = [1, 1]} : vector<8x384xf32> to vector<8x128xf32>
    %206 = arith.addf %204, %205 : vector<8x128xf32>
    %207 = arith.negf %206 : vector<8x128xf32>
    %208 = math.exp %207 : vector<8x128xf32>
    %cst_61 = arith.constant 1.000000e+00 : f32
    %209 = vector.broadcast %cst_61 : f32 to vector<8x128xf32>
    %210 = arith.addf %209, %208 : vector<8x128xf32>
    %211 = arith.divf %209, %210 : vector<8x128xf32>
    %212 = vector.extract_strided_slice %194 {offsets = [0, 256], sizes = [8, 128], strides = [1, 1]} : vector<8x384xf32> to vector<8x128xf32>
    %213 = vector.extract_strided_slice %195 {offsets = [0, 256], sizes = [8, 128], strides = [1, 1]} : vector<8x384xf32> to vector<8x128xf32>
    %214 = arith.addf %213, %15 : vector<8x128xf32>
    %215 = arith.mulf %203, %214 : vector<8x128xf32>
    %216 = arith.addf %212, %215 : vector<8x128xf32>
    %217 = math.tanh %216 : vector<8x128xf32>
    %cst_62 = arith.constant 1.000000e+00 : f32
    %218 = vector.broadcast %cst_62 : f32 to vector<8x128xf32>
    %219 = arith.subf %218, %211 : vector<8x128xf32>
    %220 = arith.mulf %219, %217 : vector<8x128xf32>
    %221 = arith.mulf %211, %187 : vector<8x128xf32>
    %222 = arith.addf %220, %221 : vector<8x128xf32>
    %223 = arith.index_cast %c5_i32 : i32 to index
    %c0_63 = arith.constant 0 : index
    %c0_64 = arith.constant 0 : index
    %224 = vector.load %arg7[%223, %c0_63, %c0_64] : memref<8x8x128xf32, #tpu.memory_space<vmem>>, vector<1x8x128xf32>
    %225 = vector.shape_cast %224 : vector<1x8x128xf32> to vector<8x128xf32>
    %226 = vector.shape_cast %222 : vector<8x128xf32> to vector<1x8x128xf32>
    tpu.vector_store %arg7[%223, %c0_63, %c0_64], %226 {strides = array<i32>} : memref<8x8x128xf32, #tpu.memory_space<vmem>>, vector<1x8x128xf32>,
    %c6_i32 = arith.constant 6 : i32
    %227 = arith.index_cast %c6_i32 : i32 to index
    %c0_65 = arith.constant 0 : index
    %c0_66 = arith.constant 0 : index
    %228 = vector.load %arg8[%227, %c0_65, %c0_66] : memref<8x8x384xf32, #tpu.memory_space<vmem>>, vector<1x8x384xf32>
    %229 = vector.shape_cast %228 : vector<1x8x384xf32> to vector<8x384xf32>
    %cst_67 = arith.constant dense<0.000000e+00> : vector<8x384xf32>
    %230 = tpu.matmul %222, %12, %cst_67 {dimension_numbers = #tpu.dot_dimension_numbers<[1], [0], [0], [1], [0, 0, 1, 1], [], []>} : vector<8x128xf32>, vector<128x384xf32>, vector<8x384xf32> -> vector<8x384xf32>
    %231 = vector.extract_strided_slice %229 {offsets = [0, 0], sizes = [8, 128], strides = [1, 1]} : vector<8x384xf32> to vector<8x128xf32>
    %232 = vector.extract_strided_slice %230 {offsets = [0, 0], sizes = [8, 128], strides = [1, 1]} : vector<8x384xf32> to vector<8x128xf32>
    %233 = arith.addf %231, %232 : vector<8x128xf32>
    %234 = arith.negf %233 : vector<8x128xf32>
    %235 = math.exp %234 : vector<8x128xf32>
    %cst_68 = arith.constant 1.000000e+00 : f32
    %236 = vector.broadcast %cst_68 : f32 to vector<8x128xf32>
    %237 = arith.addf %236, %235 : vector<8x128xf32>
    %238 = arith.divf %236, %237 : vector<8x128xf32>
    %239 = vector.extract_strided_slice %229 {offsets = [0, 128], sizes = [8, 128], strides = [1, 1]} : vector<8x384xf32> to vector<8x128xf32>
    %240 = vector.extract_strided_slice %230 {offsets = [0, 128], sizes = [8, 128], strides = [1, 1]} : vector<8x384xf32> to vector<8x128xf32>
    %241 = arith.addf %239, %240 : vector<8x128xf32>
    %242 = arith.negf %241 : vector<8x128xf32>
    %243 = math.exp %242 : vector<8x128xf32>
    %cst_69 = arith.constant 1.000000e+00 : f32
    %244 = vector.broadcast %cst_69 : f32 to vector<8x128xf32>
    %245 = arith.addf %244, %243 : vector<8x128xf32>
    %246 = arith.divf %244, %245 : vector<8x128xf32>
    %247 = vector.extract_strided_slice %229 {offsets = [0, 256], sizes = [8, 128], strides = [1, 1]} : vector<8x384xf32> to vector<8x128xf32>
    %248 = vector.extract_strided_slice %230 {offsets = [0, 256], sizes = [8, 128], strides = [1, 1]} : vector<8x384xf32> to vector<8x128xf32>
    %249 = arith.addf %248, %15 : vector<8x128xf32>
    %250 = arith.mulf %238, %249 : vector<8x128xf32>
    %251 = arith.addf %247, %250 : vector<8x128xf32>
    %252 = math.tanh %251 : vector<8x128xf32>
    %cst_70 = arith.constant 1.000000e+00 : f32
    %253 = vector.broadcast %cst_70 : f32 to vector<8x128xf32>
    %254 = arith.subf %253, %246 : vector<8x128xf32>
    %255 = arith.mulf %254, %252 : vector<8x128xf32>
    %256 = arith.mulf %246, %222 : vector<8x128xf32>
    %257 = arith.addf %255, %256 : vector<8x128xf32>
    %258 = arith.index_cast %c6_i32 : i32 to index
    %c0_71 = arith.constant 0 : index
    %c0_72 = arith.constant 0 : index
    %259 = vector.load %arg7[%258, %c0_71, %c0_72] : memref<8x8x128xf32, #tpu.memory_space<vmem>>, vector<1x8x128xf32>
    %260 = vector.shape_cast %259 : vector<1x8x128xf32> to vector<8x128xf32>
    %261 = vector.shape_cast %257 : vector<8x128xf32> to vector<1x8x128xf32>
    tpu.vector_store %arg7[%258, %c0_71, %c0_72], %261 {strides = array<i32>} : memref<8x8x128xf32, #tpu.memory_space<vmem>>, vector<1x8x128xf32>,
    %c7_i32 = arith.constant 7 : i32
    %262 = arith.index_cast %c7_i32 : i32 to index
    %c0_73 = arith.constant 0 : index
    %c0_74 = arith.constant 0 : index
    %263 = vector.load %arg8[%262, %c0_73, %c0_74] : memref<8x8x384xf32, #tpu.memory_space<vmem>>, vector<1x8x384xf32>
    %264 = vector.shape_cast %263 : vector<1x8x384xf32> to vector<8x384xf32>
    %cst_75 = arith.constant dense<0.000000e+00> : vector<8x384xf32>
    %265 = tpu.matmul %257, %12, %cst_75 {dimension_numbers = #tpu.dot_dimension_numbers<[1], [0], [0], [1], [0, 0, 1, 1], [], []>} : vector<8x128xf32>, vector<128x384xf32>, vector<8x384xf32> -> vector<8x384xf32>
    %266 = vector.extract_strided_slice %264 {offsets = [0, 0], sizes = [8, 128], strides = [1, 1]} : vector<8x384xf32> to vector<8x128xf32>
    %267 = vector.extract_strided_slice %265 {offsets = [0, 0], sizes = [8, 128], strides = [1, 1]} : vector<8x384xf32> to vector<8x128xf32>
    %268 = arith.addf %266, %267 : vector<8x128xf32>
    %269 = arith.negf %268 : vector<8x128xf32>
    %270 = math.exp %269 : vector<8x128xf32>
    %cst_76 = arith.constant 1.000000e+00 : f32
    %271 = vector.broadcast %cst_76 : f32 to vector<8x128xf32>
    %272 = arith.addf %271, %270 : vector<8x128xf32>
    %273 = arith.divf %271, %272 : vector<8x128xf32>
    %274 = vector.extract_strided_slice %264 {offsets = [0, 128], sizes = [8, 128], strides = [1, 1]} : vector<8x384xf32> to vector<8x128xf32>
    %275 = vector.extract_strided_slice %265 {offsets = [0, 128], sizes = [8, 128], strides = [1, 1]} : vector<8x384xf32> to vector<8x128xf32>
    %276 = arith.addf %274, %275 : vector<8x128xf32>
    %277 = arith.negf %276 : vector<8x128xf32>
    %278 = math.exp %277 : vector<8x128xf32>
    %cst_77 = arith.constant 1.000000e+00 : f32
    %279 = vector.broadcast %cst_77 : f32 to vector<8x128xf32>
    %280 = arith.addf %279, %278 : vector<8x128xf32>
    %281 = arith.divf %279, %280 : vector<8x128xf32>
    %282 = vector.extract_strided_slice %264 {offsets = [0, 256], sizes = [8, 128], strides = [1, 1]} : vector<8x384xf32> to vector<8x128xf32>
    %283 = vector.extract_strided_slice %265 {offsets = [0, 256], sizes = [8, 128], strides = [1, 1]} : vector<8x384xf32> to vector<8x128xf32>
    %284 = arith.addf %283, %15 : vector<8x128xf32>
    %285 = arith.mulf %273, %284 : vector<8x128xf32>
    %286 = arith.addf %282, %285 : vector<8x128xf32>
    %287 = math.tanh %286 : vector<8x128xf32>
    %cst_78 = arith.constant 1.000000e+00 : f32
    %288 = vector.broadcast %cst_78 : f32 to vector<8x128xf32>
    %289 = arith.subf %288, %281 : vector<8x128xf32>
    %290 = arith.mulf %289, %287 : vector<8x128xf32>
    %291 = arith.mulf %281, %257 : vector<8x128xf32>
    %292 = arith.addf %290, %291 : vector<8x128xf32>
    %293 = arith.index_cast %c7_i32 : i32 to index
    %c0_79 = arith.constant 0 : index
    %c0_80 = arith.constant 0 : index
    %294 = vector.load %arg7[%293, %c0_79, %c0_80] : memref<8x8x128xf32, #tpu.memory_space<vmem>>, vector<1x8x128xf32>
    %295 = vector.shape_cast %294 : vector<1x8x128xf32> to vector<8x128xf32>
    %296 = vector.shape_cast %292 : vector<8x128xf32> to vector<1x8x128xf32>
    tpu.vector_store %arg7[%293, %c0_79, %c0_80], %296 {strides = array<i32>} : memref<8x8x128xf32, #tpu.memory_space<vmem>>, vector<1x8x128xf32>,
    %c8_i32 = arith.constant 8 : i32
    %c0_81 = arith.constant 0 : index
    %c0_82 = arith.constant 0 : index
    %297 = vector.load %arg9[%c0_81, %c0_82] : memref<8x128xf32, #tpu.memory_space<vmem>>, vector<8x128xf32>
    tpu.vector_store %arg9[%c0_81, %c0_82], %292 {strides = array<i32>} : memref<8x128xf32, #tpu.memory_space<vmem>>, vector<8x128xf32>,
    return
  }
  func.func @transform_0(%arg0: i32, %arg1: i32) -> (i32, i32, i32) {
    %c0_i32 = arith.constant 0 : i32
    %c0_i32_0 = arith.constant 0 : i32
    return %arg1, %arg0, %c0_i32 : i32, i32, i32
  }
  func.func @transform_1(%arg0: i32, %arg1: i32) -> (i32, i32) {
    %c0_i32 = arith.constant 0 : i32
    %c0_i32_0 = arith.constant 0 : i32
    %c0_i32_1 = arith.constant 0 : i32
    return %c0_i32, %c0_i32_0 : i32, i32
  }
  func.func @transform_2(%arg0: i32, %arg1: i32) -> (i32, i32) {
    %c0_i32 = arith.constant 0 : i32
    %c0_i32_0 = arith.constant 0 : i32
    %c0_i32_1 = arith.constant 0 : i32
    return %c0_i32, %c0_i32_0 : i32, i32
  }
  func.func @transform_3(%arg0: i32, %arg1: i32) -> (i32, i32) {
    %c0_i32 = arith.constant 0 : i32
    %c0_i32_0 = arith.constant 0 : i32
    %c0_i32_1 = arith.constant 0 : i32
    return %c0_i32, %c0_i32_0 : i32, i32
  }
  func.func @transform_4(%arg0: i32, %arg1: i32) -> (i32, i32) {
    %c0_i32 = arith.constant 0 : i32
    %c0_i32_0 = arith.constant 0 : i32
    %c0_i32_1 = arith.constant 0 : i32
    return %c0_i32, %c0_i32_0 : i32, i32
  }
  func.func @transform_5(%arg0: i32, %arg1: i32) -> (i32, i32, i32) {
    %c0_i32 = arith.constant 0 : i32
    %c0_i32_0 = arith.constant 0 : i32
    return %arg1, %arg0, %c0_i32 : i32, i32, i32
  }
}

</mosaic_0001>

<bundles_post_ra>
// kernel: tpu_custom_call.1
= control target key start
LH: loop header
LB: loop body
LE: loop exit
PB: predicated region body
PF: predicated region fallthrough
CT: control target
= control target key end

     0   :  { %10 = vsyncpa [#allocation5], 0  ;;  %s3465_s0 = inlined_call_operand.hbm [shape: f32[8,8,128], index: 0, kind: input, shape index: {}]   ;;  %s3466_s1 = inlined_call_operand.hbm [shape: f32[128,384], index: 1, kind: input, shape index: {}]   ;;  %s3467_s2 = inlined_call_operand.hbm [shape: f32[128,384], index: 2, kind: input, shape index: {}]   ;;  %s3468_s3 = inlined_call_operand.vmem [shape: f32[1,384], index: 3, kind: input, shape index: {}]   ;;  %s3469_s4 = inlined_call_operand.vmem [shape: f32[1,128], index: 4, kind: input, shape index: {}]   ;;  %s3470_s5 = inlined_call_operand.hbm [shape: f32[8,8,128], index: 5, kind: output, shape index: {}]  }
   0x1   :  { %11 = vsyncpa [#allocation8], 0 }
   0x2   :  { %12 = vsyncpa [#allocation6], 0  ;;  %s2533_s18 = smov [#allocation7]  }
   0x3   :  { %s30_s19 = sshll.u32 %s2533_s18, 4  ;;  %s31_s19 = int_to_ptr.vmem [resolvable:$true] %s30_s19 }
   0x4   :  { %s2455_s20 = scalar_lea.vmem %s31_s19, 6144  ;;  %p2460_p1 = scmp.lt.s32.totalorder %s31_s19, %s31_s19 }
   0x5   :  { %p2456_p0 = scmp.ne.s32.totalorder %s31_s19, %s2455_s20  ;;  %p2461_p2 = scmp.lt.s32.totalorder %s2455_s20, %s2455_s20 }
   0x7   :  { %p2462_p3 = por %p2461_p2, %p2460_p1 }
   0x9   :  { %p2463_p4 = pnand %p2462_p3, %p2456_p0 }
   0xb   :  { %2466 = shalt.err (!%p2463_p4)
}
   0xc   :  { %s2534_s21 = smov 384   ;;  %s2535_s22 = smov 24  }
   0xd   :  { %36 = dma.hbm_to_vmem [thread:$0]  %s3466_s1, 6144, %s31_s19, [#allocation8], %s2534_s21, %s2534_s21, %s2535_s22  }
   0xe   :  { %s2536_s25 = smov [#allocation4]  }
   0xf   :  { %s18_s26 = sshll.u32 %s2536_s25, 4  ;;  %s19_s26 = int_to_ptr.vmem [resolvable:$true] %s18_s26 }
  0x10   :  { %s2475_s27 = scalar_lea.vmem %s19_s26, 1024  ;;  %p2480_p6 = scmp.lt.s32.totalorder %s19_s26, %s19_s26 }
  0x11   :  { %p2476_p5 = scmp.ne.s32.totalorder %s19_s26, %s2475_s27  ;;  %p2481_p7 = scmp.lt.s32.totalorder %s2475_s27, %s2475_s27 }
  0x13   :  { %p2482_p8 = por %p2481_p7, %p2480_p6 }
  0x15   :  { %p2483_p9 = pnand %p2482_p8, %p2476_p5 }
  0x17   :  { %2486 = shalt.err (!%p2483_p9)
}
  0x18   :  { %s2537_s28 = smov 128   ;;  %s2538_s29 = smov 8  }
  0x19   :  { %24 = dma.hbm_to_vmem [thread:$0]  %s3465_s0, 1024, %s19_s26, [#allocation5], %s2537_s28, %s2537_s28, %s2538_s29  }
  0x1a   :  { %s2539_s1 = smov [#allocation9]  }
  0x1b   :  { %s42_s7 = sshll.u32 %s2539_s1, 4  ;;  %s43_s7 = int_to_ptr.vmem [resolvable:$true] %s42_s7 }
  0x1c   :  { %s2495_s8 = scalar_lea.vmem %s43_s7, 6144  ;;  %p2500_p11 = scmp.lt.s32.totalorder %s43_s7, %s43_s7 }
  0x1d   :  { %p2496_p10 = scmp.ne.s32.totalorder %s43_s7, %s2495_s8  ;;  %p2501_p12 = scmp.lt.s32.totalorder %s2495_s8, %s2495_s8 }
  0x1f   :  { %p2502_p13 = por %p2501_p12, %p2500_p11 }
  0x21   :  { %p2503_p0 = pnand %p2502_p13, %p2496_p10 }
  0x23   :  { %2506 = shalt.err (!%p2503_p0)
}
  0x24   :  { %48 = dma.hbm_to_vmem [thread:$0]  %s3467_s2, 6144, %s43_s7, [#allocation8], %s2534_s21, %s2534_s21, %s2535_s22  }
  0x25   :  { %2527 = dma.done.wait [#allocation5], 1024  }
  0x26   :  { %2528 = vsyncadd [#allocation5], 4294966272 }
  0x27   :  { %2529 = dma.done.wait [#allocation8], 12288  }
  0x28   :  { %2530 = vsyncadd [#allocation8], 4294955008  ;;  %v3471_v0 = vmov 0.0   ;;  %v121_v1 = vld [vmem:[#allocation7 + $0x170] sm:$0xff]  ;;  %v120_v2 = vld [vmem:[#allocation7 + $0x168] sm:$0xff]  ;;  %vm2541_vm0 = vmmov 0  }
  0x29   :  { %204 = vmatprep.mubr.f32.mxu0 %v3471_v0  ;;  %v118_v3 = vld [vmem:[#allocation7 + $0x158] sm:$0xff]  ;;  %140 = vmatprep.subr.mxu0 %v121_v1  ;;  %v117_v4 = vld [vmem:[#allocation7 + $0x150] sm:$0xff]  ;;  %v115_v5 = vld [vmem:[#allocation7 + $0x140] sm:$0xff] }
  0x2a   :  { %141 = vmatpush1.msra.mxu0 %v120_v2  ;;  %v114_v6 = vld [vmem:[#allocation7 + $0x138] sm:$0xff]  ;;  %v112_v7 = vld [vmem:[#allocation7 + $0x128] sm:$0xff]  ;;  %v111_v8 = vld [vmem:[#allocation7 + $0x120] sm:$0xff] }
  0x2b   :  { %142 = vmatprep.subr.mxu0 %v118_v3  ;;  %v109_v9 = vld [vmem:[#allocation7 + $0x110] sm:$0xff]  ;;  %v108_v10 = vld [vmem:[#allocation7 + $0x108] sm:$0xff]  ;;  %v106_v11 = vld [vmem:[#allocation7 + $0xf8] sm:$0xff] }
  0x2c   :  { %143 = vmatpush1.msra.mxu0 %v117_v4  ;;  %v105_v12 = vld [vmem:[#allocation7 + $0xf0] sm:$0xff]  ;;  %v103_v13 = vld [vmem:[#allocation7 + $0xe0] sm:$0xff]  ;;  %v122_v14 = vld [vmem:[#allocation7 + $0x178] sm:$0xff] }
  0x2d   :  { %144 = vmatprep.subr.mxu0 %v115_v5  ;;  %v102_v15 = vld [vmem:[#allocation7 + $0xd8] sm:$0xff]  ;;  %1984 = vmatprep.subr.mxu1 %v122_v14  ;;  %v119_v16 = vld [vmem:[#allocation7 + $0x160] sm:$0xff]  ;;  %v100_v17 = vld [vmem:[#allocation7 + $0xc8] sm:$0xff] }
  0x2e   :  { %145 = vmatpush1.msra.mxu0 %v114_v6  ;;  %1985 = vmatpush3.msra.mxu1 %v122_v14  ;;  %v116_v18 = vld [vmem:[#allocation7 + $0x148] sm:$0xff]  ;;  %v99_v19 = vld [vmem:[#allocation7 + $0xc0] sm:$0xff]  ;;  %v97_v20 = vld [vmem:[#allocation7 + $0xb0] sm:$0xff] }
  0x2f   :  { %146 = vmatprep.subr.mxu0 %v112_v7  ;;  %1986 = vmatprep.subr.mxu1 %v119_v16  ;;  %v113_v21 = vld [vmem:[#allocation7 + $0x130] sm:$0xff]  ;;  %v96_v22 = vld [vmem:[#allocation7 + $0xa8] sm:$0xff]  ;;  %v94_v23 = vld [vmem:[#allocation7 + $0x98] sm:$0xff] }
  0x30   :  { %147 = vmatpush1.msra.mxu0 %v111_v8  ;;  %1987 = vmatpush3.msra.mxu1 %v119_v16  ;;  %v110_v24 = vld [vmem:[#allocation7 + $0x118] sm:$0xff]  ;;  %v93_v25 = vld [vmem:[#allocation7 + $0x90] sm:$0xff]  ;;  %v91_v26 = vld [vmem:[#allocation7 + $0x80] sm:$0xff] }
  0x31   :  { %148 = vmatprep.subr.mxu0 %v109_v9  ;;  %1988 = vmatprep.subr.mxu1 %v116_v18  ;;  %v107_v27 = vld [vmem:[#allocation7 + $0x100] sm:$0xff]  ;;  %v90_v28 = vld [vmem:[#allocation7 + $0x78] sm:$0xff]  ;;  %v88_v29 = vld [vmem:[#allocation7 + $0x68] sm:$0xff] }
  0x32   :  { %149 = vmatpush1.msra.mxu0 %v108_v10  ;;  %1989 = vmatpush3.msra.mxu1 %v116_v18  ;;  %v104_v30 = vld [vmem:[#allocation7 + $0xe8] sm:$0xff]  ;;  %v87_v31 = vld [vmem:[#allocation7 + $0x60] sm:$0xff]  ;;  %v85_v32 = vld [vmem:[#allocation7 + $0x50] sm:$0xff] }
  0x33   :  { %150 = vmatprep.subr.mxu0 %v106_v11  ;;  %1990 = vmatprep.subr.mxu1 %v113_v21  ;;  %v101_v33 = vld [vmem:[#allocation7 + $0xd0] sm:$0xff]  ;;  %v84_v34 = vld [vmem:[#allocation7 + $0x48] sm:$0xff]  ;;  %v82_v35 = vld [vmem:[#allocation7 + $0x38] sm:$0xff] }
  0x34   :  { %151 = vmatpush1.msra.mxu0 %v105_v12  ;;  %1991 = vmatpush3.msra.mxu1 %v113_v21  ;;  %v98_v36 = vld [vmem:[#allocation7 + $0xb8] sm:$0xff]  ;;  %v81_v37 = vld [vmem:[#allocation7 + $0x30] sm:$0xff]  ;;  %v79_v38 = vld [vmem:[#allocation7 + $0x20] sm:$0xff] }
  0x35   :  { %152 = vmatprep.subr.mxu0 %v103_v13  ;;  %1992 = vmatprep.subr.mxu1 %v110_v24  ;;  %v95_v39 = vld [vmem:[#allocation7 + $0xa0] sm:$0xff]  ;;  %v78_v40 = vld [vmem:[#allocation7 + $0x18] sm:$0xff]  ;;  %v76_v41 = vld [vmem:[#allocation7 + $0x8] sm:$0xff] }
  0x36   :  { %153 = vmatpush1.msra.mxu0 %v102_v15  ;;  %1993 = vmatpush3.msra.mxu1 %v110_v24  ;;  %v92_v42 = vld [vmem:[#allocation7 + $0x88] sm:$0xff]  ;;  %v75_v43 = vld [vmem:[#allocation7] sm:$0xff]  ;;  %v2588_v45 = vld [vmem:[#allocation9 + $0x170] sm:$0xff] }
  0x37   :  { %154 = vmatprep.subr.mxu0 %v100_v17  ;;  %1994 = vmatprep.subr.mxu1 %v107_v27  ;;  %v2586_v44 = vld [vmem:[#allocation4] sm:$0xff]  ;;  %3489 = vst [vmem:[#allocation14_spill] sm:$0xff] %v2588_v45  ;;  %v2590_v46 = vld [vmem:[#allocation9 + $0x168] sm:$0xff]  ;;  %v2592_v47 = vld [vmem:[#allocation9 + $0x158] sm:$0xff] }
  0x38   :  { %155 = vmatpush1.msra.mxu0 %v99_v19  ;;  %1995 = vmatpush3.msra.mxu1 %v107_v27  ;;  %v89_v48 = vld [vmem:[#allocation7 + $0x70] sm:$0xff]  ;;  %v2600_v50 = vld [vmem:[#allocation4 + $0x8] sm:$0xff]  ;;  %v2602_v51 = vld [vmem:[#allocation9 + $0x140] sm:$0xff] }
  0x39   :  { %156 = vmatprep.subr.mxu0 %v97_v20  ;;  %1996 = vmatprep.subr.mxu1 %v104_v30  ;;  %v2596_v49 = vld [vmem:[#allocation9 + $0x150] sm:$0xff]  ;;  %v2605_v52 = vld [vmem:[#allocation9 + $0x138] sm:$0xff]  ;;  %v2608_v53 = vld [vmem:[#allocation9 + $0x128] sm:$0xff] }
  0x3a   :  { %157 = vmatpush1.msra.mxu0 %v96_v22  ;;  %1997 = vmatpush3.msra.mxu1 %v104_v30  ;;  %v86_v54 = vld [vmem:[#allocation7 + $0x58] sm:$0xff]  ;;  %v2612_v55 = vld [vmem:[#allocation9 + $0x120] sm:$0xff]  ;;  %v2616_v56 = vld [vmem:[#allocation4 + $0x10] sm:$0xff] }
  0x3b   :  { %158 = vmatprep.subr.mxu0 %v94_v23  ;;  %1998 = vmatprep.subr.mxu1 %v101_v33  ;;  %v2618_v57 = vld [vmem:[#allocation9 + $0x110] sm:$0xff]  ;;  %v2621_v58 = vld [vmem:[#allocation9 + $0x108] sm:$0xff]  ;;  %v2624_v59 = vld [vmem:[#allocation9 + $0xf8] sm:$0xff] }
  0x3c   :  { %159 = vmatpush1.msra.mxu0 %v93_v25  ;;  %1999 = vmatpush3.msra.mxu1 %v101_v33  ;;  %v83_v60 = vld [vmem:[#allocation7 + $0x40] sm:$0xff]  ;;  %v2628_v61 = vld [vmem:[#allocation9 + $0xf0] sm:$0xff]  ;;  %v2632_v62 = vld [vmem:[#allocation4 + $0x18] sm:$0xff] }
  0x3d   :  { %160 = vmatprep.subr.mxu0 %v91_v26  ;;  %2000 = vmatprep.subr.mxu1 %v98_v36  ;;  %v2634_v63 = vld [vmem:[#allocation9 + $0xe0] sm:$0xff]  ;;  %v2637_v1 = vld [vmem:[#allocation9 + $0xd8] sm:$0xff]  ;;  %v2640_v2 = vld [vmem:[#allocation9 + $0xc8] sm:$0xff] }
  0x3e   :  { %161 = vmatpush1.msra.mxu0 %v90_v28  ;;  %2001 = vmatpush3.msra.mxu1 %v98_v36  ;;  %v80_v3 = vld [vmem:[#allocation7 + $0x28] sm:$0xff]  ;;  %v2644_v4 = vld [vmem:[#allocation9 + $0xc0] sm:$0xff]  ;;  %v2650_v6 = vld [vmem:[#allocation9 + $0xb0] sm:$0xff] }
  0x3f   :  { %162 = vmatprep.subr.mxu0 %v88_v29  ;;  %2002 = vmatprep.subr.mxu1 %v95_v39  ;;  %v2648_v5 = vld [vmem:[#allocation4 + $0x20] sm:$0xff]  ;;  %v2653_v7 = vld [vmem:[#allocation9 + $0xa8] sm:$0xff]  ;;  %v2656_v8 = vld [vmem:[#allocation9 + $0x98] sm:$0xff] }
  0x40   :  { %163 = vmatpush1.msra.mxu0 %v87_v31  ;;  %2003 = vmatpush3.msra.mxu1 %v95_v39  ;;  %v77_v9 = vld [vmem:[#allocation7 + $0x10] sm:$0xff]  ;;  %v72_v11 = vld [vmem:[#allocation4 + $0x28] sm:$0xff]  ;;  %v2664_v12 = vld [vmem:[#allocation9 + $0x80] sm:$0xff] }
  0x41   :  { %164 = vmatprep.subr.mxu0 %v85_v32  ;;  %2004 = vmatprep.subr.mxu1 %v92_v42  ;;  %v2660_v10 = vld [vmem:[#allocation9 + $0x90] sm:$0xff]  ;;  %v2667_v13 = vld [vmem:[#allocation9 + $0x78] sm:$0xff]  ;;  %v2670_v14 = vld [vmem:[#allocation9 + $0x68] sm:$0xff] }
  0x42   :  { %165 = vmatpush1.msra.mxu0 %v84_v34  ;;  %2005 = vmatpush3.msra.mxu1 %v92_v42  ;;  %v2673_v15 = vld [vmem:[#allocation9 + $0x60] sm:$0xff]  ;;  %v73_v16 = vld [vmem:[#allocation4 + $0x30] sm:$0xff]  ;;  %v2680_v18 = vld [vmem:[#allocation9 + $0x48] sm:$0xff]  ;;  %v125_v42 = vlaneseq }
  0x43   :  { %166 = vmatprep.subr.mxu0 %v82_v35  ;;  %2006 = vmatprep.subr.mxu1 %v89_v48  ;;  %v2677_v17 = vld [vmem:[#allocation9 + $0x50] sm:$0xff]  ;;  %v2684_v19 = vld [vmem:[#allocation9 + $0x38] sm:$0xff]  ;;  %v2694_v23 = vld [vmem:[#allocation9 + $0x20] sm:$0xff] }
  0x44   :  { %167 = vmatpush1.msra.mxu0 %v81_v37  ;;  %2007 = vmatpush3.msra.mxu1 %v89_v48  ;;  %v2688_v20 = vld [vmem:[#allocation9 + $0x30] sm:$0xff]  ;;  %v2690_v21 = vld [vmem:[#allocation9 + $0x178] sm:$0xff]  ;;  %v2701_v25 = vld [vmem:[#allocation9 + $0x8] sm:$0xff] }
  0x45   :  { %168 = vmatprep.subr.mxu0 %v79_v38  ;;  %2008 = vmatprep.subr.mxu1 %v86_v54  ;;  %v74_v22 = vld [vmem:[#allocation4 + $0x38] sm:$0xff]  ;;  %3491 = vst [vmem:[#allocation16_spill] sm:$0xff] %v2701_v25  ;;  %v2705_v26 = vld [vmem:[#allocation9] sm:$0xff]  ;;  %v2713_v28 = vld [vmem:[#allocation9 + $0x148] sm:$0xff] }
  0x46   :  { %169 = vmatpush1.msra.mxu0 %v78_v40  ;;  %2009 = vmatpush3.msra.mxu1 %v86_v54  ;;  %v2697_v24 = vld [vmem:[#allocation9 + $0x18] sm:$0xff]  ;;  %3492 = vst [vmem:[#allocation17_spill] sm:$0xff] %v2705_v26  ;;  %v2707_v27 = vld [vmem:[#allocation9 + $0x160] sm:$0xff]  ;;  %v2719_v29 = vld [vmem:[#allocation9 + $0x130] sm:$0xff] }
  0x47   :  { %170 = vmatprep.subr.mxu0 %v76_v41  ;;  %2010 = vmatprep.subr.mxu1 %v83_v60  ;;  %3490 = vst [vmem:[#allocation15_spill] sm:$0xff] %v2697_v24  ;;  %v2724_v30 = vld [vmem:[#allocation9 + $0x118] sm:$0xff]  ;;  %v2730_v31 = vld [vmem:[#allocation9 + $0x100] sm:$0xff]  ;;  %v2736_v32 = vld [vmem:[#allocation9 + $0xe8] sm:$0xff] }
  0x48   :  { %171 = vmatpush1.msra.mxu0 %v75_v43  ;;  %2011 = vmatpush3.msra.mxu1 %v83_v60  ;;  %v2740_v33 = vld [vmem:[#allocation9 + $0xd0] sm:$0xff]  ;;  %v2746_v34 = vld [vmem:[#allocation9 + $0xb8] sm:$0xff]  ;;  %v2752_v35 = vld [vmem:[#allocation9 + $0xa0] sm:$0xff]  ;;  %v126_v43 = vshrl.u32 %v125_v42, 7 }
  0x49   :  { %205 = vmatmul.mubr.f32.vlgmr.msra.gmra.mxu0 %v2586_v44  ;;  %441 = vmatprep.subr.mxu0 %v2588_v45  ;;  %v2758_v36 = vld [vmem:[#allocation9 + $0x88] sm:$0xff]  ;;  %v2764_v37 = vld [vmem:[#allocation9 + $0x70] sm:$0xff]  ;;  %v2770_v38 = vld [vmem:[#allocation9 + $0x58] sm:$0xff] }
  0x4a   :  { %442 = vmatpush1.msra.mxu0 %v2590_v46  ;;  %210 = vmatprep.mubr.f32.mxu0 %v3471_v0  ;;  %v2776_v39 = vld [vmem:[#allocation9 + $0x40] sm:$0xff]  ;;  %v2782_v40 = vld [vmem:[#allocation9 + $0x28] sm:$0xff]  ;;  %v2788_v41 = vld [vmem:[#allocation9 + $0x10] sm:$0xff]  ;;  %v131_v54 = vsub.s32 1, %v126_v43 }
  0x4b   :  { %443 = vmatprep.subr.mxu0 %v2592_v47  ;;  %2012 = vmatprep.subr.mxu1 %v80_v3  ;;  %3493 = vst [vmem:[#allocation18_spill] sm:$0xff] %v2782_v40  ;;  %3494 = vst [vmem:[#allocation19_spill] sm:$0xff] %v2788_v41  ;;  %v123_v48 = vld [vmem:[%s3468_s3] sm:$0x7] }
  0x4c   :  { %444 = vmatpush1.msra.mxu0 %v2596_v49  ;;  %2013 = vmatpush3.msra.mxu1 %v80_v3  ;;  %v132_v3 = vrot.slane %v123_v48, %v131_v54 }
  0x4d   :  { %211 = vmatmul.mubr.f32.gmra.mxu0 %v2600_v50  ;;  %445 = vmatprep.subr.mxu0 %v2602_v51 }
  0x4e   :  { %446 = vmatpush1.msra.mxu0 %v2605_v52  ;;  %216 = vmatprep.mubr.f32.mxu0 %v3471_v0 }
  0x4f   :  { %447 = vmatprep.subr.mxu0 %v2608_v53  ;;  %2014 = vmatprep.subr.mxu1 %v77_v9 }
  0x50   :  { %448 = vmatpush1.msra.mxu0 %v2612_v55  ;;  %2015 = vmatpush3.msra.mxu1 %v77_v9 }
  0x51   :  { %217 = vmatmul.mubr.f32.gmra.mxu0 %v2616_v56  ;;  %449 = vmatprep.subr.mxu0 %v2618_v57 }
  0x52   :  { %450 = vmatpush1.msra.mxu0 %v2621_v58  ;;  %222 = vmatprep.mubr.f32.mxu0 %v3471_v0 }
  0x53   :  { %451 = vmatprep.subr.mxu0 %v2624_v59  ;;  %2016 = vmatprep.mubr.f32.mxu1 %v2586_v44  ;;  %v127_v44 = vsub.s32 0, %v126_v43 }
  0x54   :  { %452 = vmatpush1.msra.mxu0 %v2628_v61  ;;  %2028 = vmatprep.subr.mxu1 %v3471_v0 }
  0x55   :  { %223 = vmatmul.mubr.f32.gmra.mxu0 %v2632_v62  ;;  %453 = vmatprep.subr.mxu0 %v2634_v63  ;;  %v128_v60 = vrot.slane %v123_v48, %v127_v44 }
  0x56   :  { %454 = vmatpush1.msra.mxu0 %v2637_v1  ;;  %228 = vmatprep.mubr.f32.mxu0 %v3471_v0 }
  0x57   :  { %455 = vmatprep.subr.mxu0 %v2640_v2  ;;  %2017 = vmatmul.mubr.f32.vlgmr.msra.gmra.mxu1 %v2600_v50 }
  0x58   :  { %456 = vmatpush1.msra.mxu0 %v2644_v4  ;;  %2029 = vmatpush3.msra.mxu1 %v2690_v21 }
  0x59   :  { %229 = vmatmul.mubr.f32.gmra.mxu0 %v2648_v5  ;;  %457 = vmatprep.subr.mxu0 %v2650_v6 }
  0x5a   :  { %458 = vmatpush1.msra.mxu0 %v2653_v7  ;;  %234 = vmatprep.mubr.f32.mxu0 %v3471_v0 }
  0x5b   :  { %459 = vmatprep.subr.mxu0 %v2656_v8  ;;  %2030 = vmatprep.subr.mxu1 %v3471_v0 }
  0x5c   :  { %460 = vmatpush1.msra.mxu0 %v2660_v10  ;;  %2031 = vmatpush3.msra.mxu1 %v2707_v27 }
  0x5d   :  { %235 = vmatmul.mubr.f32.gmra.mxu0 %v72_v11  ;;  %461 = vmatprep.subr.mxu0 %v2664_v12 }
  0x5e   :  { %462 = vmatpush1.msra.mxu0 %v2667_v13  ;;  %240 = vmatprep.mubr.f32.mxu0 %v3471_v0 }
  0x5f   :  { %463 = vmatprep.subr.mxu0 %v2670_v14  ;;  %2032 = vmatprep.subr.mxu1 %v3471_v0 }
  0x60   :  { %464 = vmatpush1.msra.mxu0 %v2673_v15  ;;  %2033 = vmatpush3.msra.mxu1 %v2713_v28 }
  0x61   :  { %241 = vmatmul.mubr.f32.gmra.mxu0 %v73_v16  ;;  %465 = vmatprep.subr.mxu0 %v2677_v17 }
  0x62   :  { %466 = vmatpush1.msra.mxu0 %v2680_v18  ;;  %246 = vmatprep.mubr.f32.mxu0 %v3471_v0 }
  0x63   :  { %467 = vmatprep.subr.mxu0 %v2684_v19  ;;  %2019 = vmatprep.mubr.f32.mxu1 %v2616_v56 }
  0x64   :  { %468 = vmatpush1.msra.mxu0 %v2688_v20  ;;  %2034 = vmatprep.subr.mxu1 %v3471_v0 }
  0x65   :  { %247 = vmatmul.mubr.f32.gmra.mxu0 %v74_v22  ;;  %469 = vmatprep.subr.mxu0 %v2694_v23 }
  0x66   :  { %470 = vmatpush1.msra.mxu0 %v2697_v24  ;;  %505 = vmatprep.mubr.f32.mxu0 %v3471_v0 }
  0x67   :  { %471 = vmatprep.subr.mxu0 %v2701_v25  ;;  %2020 = vmatmul.mubr.f32.gmra.mxu1 %v2632_v62 }
  0x68   :  { %472 = vmatpush1.msra.mxu0 %v2705_v26  ;;  %2035 = vmatpush3.msra.mxu1 %v2719_v29 }
  0x69   :  { %506 = vmatmul.mubr.f32.vlgmr.msra.gmra.mxu0 %v3471_v0  ;;  %2022 = vmatprep.mubr.f32.mxu1 %v2648_v5 }
  0x6a   :  { %2036 = vmatprep.subr.mxu1 %v3471_v0  ;;  %609 = vmatprep.subr.mxu0 %v2588_v45 }
  0x6b   :  { %2037 = vmatpush3.msra.mxu1 %v2724_v30  ;;  %610 = vmatpush1.msra.mxu0 %v2590_v46 }
  0x6c   :  { %2038 = vmatprep.subr.mxu1 %v3471_v0  ;;  %2023 = vmatmul.mubr.f32.gmra.mxu1 %v72_v11 }
  0x6d   :  { %2039 = vmatpush3.msra.mxu1 %v2730_v31  ;;  %2025 = vmatprep.mubr.f32.mxu1 %v73_v16 }
  0x6e   :  { %2040 = vmatprep.subr.mxu1 %v3471_v0  ;;  %611 = vmatprep.subr.mxu0 %v2592_v47 }
  0x6f   :  { %2041 = vmatpush3.msra.mxu1 %v2736_v32  ;;  %612 = vmatpush1.msra.mxu0 %v2596_v49 }
  0x70   :  { %2042 = vmatprep.subr.mxu1 %v3471_v0  ;;  %2026 = vmatmul.mubr.f32.gmra.mxu1 %v74_v22 }
  0x71   :  { %2043 = vmatpush3.msra.mxu1 %v2740_v33  ;;  %2060 = vmatprep.mubr.msk.f32.mxu1 %vm2541_vm0, %v3471_v0 }
  0x72   :  { %2044 = vmatprep.subr.mxu1 %v3471_v0  ;;  %613 = vmatprep.subr.mxu0 %v2602_v51 }
  0x73   :  { %2045 = vmatpush3.msra.mxu1 %v2746_v34  ;;  %614 = vmatpush1.msra.mxu0 %v2605_v52 }
  0x74   :  { %2046 = vmatprep.subr.mxu1 %v3471_v0  ;;  %615 = vmatprep.subr.mxu0 %v2608_v53 }
  0x75   :  { %2047 = vmatpush3.msra.mxu1 %v2752_v35  ;;  %616 = vmatpush1.msra.mxu0 %v2612_v55 }
  0x76   :  { %2048 = vmatprep.subr.mxu1 %v3471_v0  ;;  %617 = vmatprep.subr.mxu0 %v2618_v57 }
  0x77   :  { %2049 = vmatpush3.msra.mxu1 %v2758_v36  ;;  %618 = vmatpush1.msra.mxu0 %v2621_v58 }
  0x78   :  { %2050 = vmatprep.subr.mxu1 %v3471_v0  ;;  %619 = vmatprep.subr.mxu0 %v2624_v59 }
  0x79   :  { %2051 = vmatpush3.msra.mxu1 %v2764_v37  ;;  %620 = vmatpush1.msra.mxu0 %v2628_v61 }
  0x7a   :  { %2052 = vmatprep.subr.mxu1 %v3471_v0  ;;  %621 = vmatprep.subr.mxu0 %v2634_v63 }
  0x7b   :  { %2053 = vmatpush3.msra.mxu1 %v2770_v38  ;;  %622 = vmatpush1.msra.mxu0 %v2637_v1 }
  0x7c   :  { %2054 = vmatprep.subr.mxu1 %v3471_v0  ;;  %623 = vmatprep.subr.mxu0 %v2640_v2 }
  0x7d   :  { %2055 = vmatpush3.msra.mxu1 %v2776_v39  ;;  %624 = vmatpush1.msra.mxu0 %v2644_v4 }
  0x7e   :  { %2056 = vmatprep.subr.mxu1 %v3471_v0  ;;  %625 = vmatprep.subr.mxu0 %v2650_v6 }
  0x7f   :  { %2057 = vmatpush3.msra.mxu1 %v2782_v40  ;;  %626 = vmatpush1.msra.mxu0 %v2653_v7 }
  0x80   :  { %2058 = vmatprep.subr.mxu1 %v3471_v0  ;;  %627 = vmatprep.subr.mxu0 %v2656_v8 }
  0x81   :  { %2059 = vmatpush3.msra.mxu1 %v2788_v41  ;;  %628 = vmatpush1.msra.mxu0 %v2660_v10 }
  0x82   :  { %2061 = vmatmul.mubr.f32.vlgmr.msra.gmra.mxu1 %v3471_v0  ;;  %2063 = vmatprep.subr.mxu1 %v3471_v0 }
  0x83   :  { %2064 = vmatpush3.msra.mxu1 %v2690_v21  ;;  %629 = vmatprep.subr.mxu0 %v2664_v12 }
  0x84   :  { %2065 = vmatprep.subr.mxu1 %v3471_v0  ;;  %630 = vmatpush1.msra.mxu0 %v2667_v13 }
  0x85   :  { %2066 = vmatpush3.msra.mxu1 %v2707_v27  ;;  %631 = vmatprep.subr.mxu0 %v2670_v14 }
  0x86   :  { %2067 = vmatprep.subr.mxu1 %v3471_v0  ;;  %632 = vmatpush1.msra.mxu0 %v2673_v15 }
  0x87   :  { %2068 = vmatpush3.msra.mxu1 %v2713_v28  ;;  %633 = vmatprep.subr.mxu0 %v2677_v17 }
  0x88   :  { %2069 = vmatprep.subr.mxu1 %v3471_v0  ;;  %634 = vmatpush1.msra.mxu0 %v2680_v18 }
  0x89   :  { %2070 = vmatpush3.msra.mxu1 %v2719_v29  ;;  %635 = vmatprep.subr.mxu0 %v2684_v19 }
  0x8a   :  { %2071 = vmatprep.subr.mxu1 %v3471_v0  ;;  %636 = vmatpush1.msra.mxu0 %v2688_v20 }
  0x8b   :  { %2072 = vmatpush3.msra.mxu1 %v2724_v30  ;;  %637 = vmatprep.subr.mxu0 %v2694_v23 }
  0x8c   :  { %2073 = vmatprep.subr.mxu1 %v3471_v0  ;;  %638 = vmatpush1.msra.mxu0 %v2697_v24 }
  0x8d   :  { %2074 = vmatpush3.msra.mxu1 %v2730_v31  ;;  %639 = vmatprep.subr.mxu0 %v2701_v25 }
  0x8e   :  { %2075 = vmatprep.subr.mxu1 %v3471_v0  ;;  %640 = vmatpush1.msra.mxu0 %v2705_v26 }
  0x8f   :  { %2076 = vmatpush3.msra.mxu1 %v2736_v32  ;;  %673 = vmatprep.mubr.f32.mxu0 %v3471_v0 }
  0x90   :  { %2077 = vmatprep.subr.mxu1 %v3471_v0  ;;  %2095 = vmatprep.mubr.msk.f32.mxu1 %vm2541_vm0, %v3471_v0 }
  0x91   :  { %2078 = vmatpush3.msra.mxu1 %v2740_v33  ;;  %778 = vmatprep.subr.mxu0 %v2588_v45 }
  0x92   :  { %2079 = vmatprep.subr.mxu1 %v3471_v0 }
  0x93   :  { %2080 = vmatpush3.msra.mxu1 %v2746_v34 }
  0x94   :  { %2081 = vmatprep.subr.mxu1 %v3471_v0 }
  0x95   :  { %2082 = vmatpush3.msra.mxu1 %v2752_v35 }
  0x96   :  { %2083 = vmatprep.subr.mxu1 %v3471_v0 }
  0x97   :  { %2084 = vmatpush3.msra.mxu1 %v2758_v36 }
  0x98   :  { %2085 = vmatprep.subr.mxu1 %v3471_v0 }
  0x99   :  { %2086 = vmatpush3.msra.mxu1 %v2764_v37 }
  0x9a   :  { %2087 = vmatprep.subr.mxu1 %v3471_v0 }
  0x9b   :  { %2088 = vmatpush3.msra.mxu1 %v2770_v38 }
  0x9c   :  { %2089 = vmatprep.subr.mxu1 %v3471_v0 }
  0x9d   :  { %2090 = vmatpush3.msra.mxu1 %v2776_v39 }
  0x9e   :  { %2091 = vmatprep.subr.mxu1 %v3471_v0 }
  0x9f   :  { %2092 = vmatpush3.msra.mxu1 %v2782_v40 }
  0xa0   :  { %2093 = vmatprep.subr.mxu1 %v3471_v0 }
  0xa1   :  { %2094 = vmatpush3.msra.mxu1 %v2788_v41 }
  0xa2   :  { %2098 = vmatprep.subr.mxu1 %v3471_v0 }
 0x109   :  { %v206_v50 = vpop.f32.mrf.mxu0 }
 0x10b   :  { %v208_v56 = vpop.f32.mrf.mxu0 }
 0x10d   :  { %v212_v62 = vpop.f32.mrf.mxu0 }
 0x10e   :  { %v2850_v5 = vadd.f32 %v212_v62, %v128_v60 }
 0x10f   :  { %v214_v9 = vpop.f32.mrf.mxu0 }
 0x110   :  { %3495 = vst [vmem:[#allocation20_spill] sm:$0xff] %v2850_v5  ;;  %v2852_v11 = vadd.f32 %v214_v9, %v132_v3  ;;  %v135_v9 = vsub.s32 2, %v126_v43 }
 0x111   :  { %v218_v16 = vpop.f32.mrf.mxu0 }
 0x112   :  { %3496 = vst [vmem:[#allocation21_spill] sm:$0xff] %v2852_v11  ;;  %v2854_v22 = vadd.f32 %v218_v16, %v128_v60 }
 0x113   :  { %v220_v42 = vpop.f32.mrf.mxu0 }
 0x114   :  { %3497 = vst [vmem:[#allocation22_spill] sm:$0xff] %v2854_v22  ;;  %v2856_v0 = vadd.f32 %v220_v42, %v132_v3  ;;  %v136_v42 = vrot.slane %v123_v48, %v135_v9 }
 0x115   :  { %v224_v45 = vpop.f32.mrf.mxu0 }
 0x116   :  { %3498 = vst [vmem:[#allocation23_spill] sm:$0xff] %v2856_v0  ;;  %v2858_v41 = vadd.f32 %v224_v45, %v128_v60 }
 0x117   :  { %v226_v26 = vpop.f32.mrf.mxu0 }
 0x118   :  { %3499 = vst [vmem:[#allocation24_spill] sm:$0xff] %v2858_v41  ;;  %v2860_v25 = vadd.f32 %v226_v26, %v132_v3  ;;  %v2018_v26 = vpop.f32.mrf.mxu1 }
 0x119   :  { %v230_v44 = vpop.f32.mrf.mxu0 }
 0x11a   :  { %3500 = vst [vmem:[#allocation25_spill] sm:$0xff] %v2860_v25  ;;  %v2862_v40 = vadd.f32 %v230_v44, %v128_v60  ;;  %v2874_v44 = vadd.f32 %v2018_v26, %v136_v42 }
 0x11b   :  { %v232_v54 = vpop.f32.mrf.mxu0 }
 0x11c   :  { %3501 = vst [vmem:[#allocation26_spill] sm:$0xff] %v2862_v40  ;;  %v2864_v62 = vadd.f32 %v232_v54, %v132_v3 }
 0x11d   :  { %v236_v11 = vpop.f32.mrf.mxu0 }
 0x11e   :  { %3502 = vst [vmem:[#allocation27_spill] sm:$0xff] %v2864_v62  ;;  %v2866_v5 = vadd.f32 %v236_v11, %v128_v60  ;;  %v207_v62 = vadd.f32 %v206_v50, %v128_v60 }
 0x11f   :  { %v238_v16 = vpop.f32.mrf.mxu0 }
 0x120   :  { %3503 = vst [vmem:[#allocation28_spill] sm:$0xff] %v2866_v5  ;;  %v2868_v22 = vadd.f32 %v238_v16, %v132_v3  ;;  %v319_v16 = vpop.f32.mrf.mxu1 }
 0x121   :  { %v242_v0 = vpop.f32.mrf.mxu0 }
 0x122   :  { %3504 = vst [vmem:[#allocation29_spill] sm:$0xff] %v2868_v22  ;;  %v2870_v45 = vadd.f32 %v242_v0, %v128_v60 }
 0x123   :  { %v244_v41 = vpop.f32.mrf.mxu0 }
 0x124   :  { %3505 = vst [vmem:[#allocation30_spill] sm:$0xff] %v2870_v45  ;;  %v2872_v25 = vadd.f32 %v244_v41, %v132_v3  ;;  %v209_v41 = vadd.f32 %v208_v56, %v132_v3 }
 0x125   :  { %v248_v40 = vpop.f32.mrf.mxu0 }
 0x126   :  { %3506 = vst [vmem:[#allocation31_spill] sm:$0xff] %v2872_v25  ;;  %v2876_v54 = vadd.f32 %v248_v40, %v128_v60 }
 0x127   :  { %v250_v43 = vpop.f32.mrf.mxu0  ;;  %v2021_v48 = vpop.f32.mrf.mxu1 }
 0x128   :  { %3507 = vst [vmem:[#allocation32_spill] sm:$0xff] %v2876_v54  ;;  %v2878_v11 = vadd.f32 %v250_v43, %v132_v3  ;;  %v2880_v0 = vadd.f32 %v2021_v48, %v136_v42 }
 0x129   :  { %v507_v5 = vpop.f32.mrf.mxu0  ;;  %v329_v24 = vpop.f32.mrf.mxu1 }
 0x12a   :  { %3508 = vst [vmem:[#allocation33_spill] sm:$0xff] %v2878_v11  ;;  %v582_v22 = vadd.f32 %v507_v5, %v207_v62  ;;  %3509 = vst [vmem:[#allocation34_spill] sm:$0xff] %v2880_v0  ;;  %v2882_v26 = vadd.f32 %v329_v24, %v136_v42 }
 0x12b   :  { %v509_v45 = vpop.f32.mrf.mxu0 }
 0x12c   :  { %v1808_v9 = vmul.f32 -1.442695, %v582_v22  ;;  %3510 = vst [vmem:[#allocation35_spill] sm:$0xff] %v2882_v26  ;;  %v2024_v25 = vpop.f32.mrf.mxu1  ;;  %v589_v40 = vadd.f32 %v509_v45, %v209_v41 }
 0x12d   :  { %v2884_v54 = vadd.f32 %v2024_v25, %v136_v42  ;;  %v2895_v25 = vld [vmem:[%s3469_s4] ss:$0 sm:$0xff] }
 0x12e   :  { %2318 = vpow2.f32 %v1808_v9  ;;  %v339_v50 = vpop.f32.mrf.mxu1  ;;  %v1809_v11 = vmul.f32 -1.442695, %v589_v40 }
 0x12f   :  { %3511 = vst [vmem:[#allocation36_spill] sm:$0xff] %v2884_v54  ;;  %v2886_v60 = vadd.f32 %v339_v50, %v136_v42  ;;  %v320_v50 = vadd.f32 %v319_v16, %v136_v42  ;;  %v3516_v16 = vld [vmem:[#allocation15_spill] sm:$0xff] }
 0x130   :  { %v2027_v43 = vpop.f32.mrf.mxu1  ;;  %2320 = vpow2.f32 %v1809_v11 }
 0x131   :  { %3512 = vst [vmem:[#allocation37_spill] sm:$0xff] %v2886_v60  ;;  %v2888_v5 = vadd.f32 %v2027_v43, %v136_v42 }
 0x132   :  { %v349_v22 = vpop.f32.mrf.mxu1 }
 0x133   :  { %3513 = vst [vmem:[#allocation38_spill] sm:$0xff] %v2888_v5  ;;  %v2890_v62 = vadd.f32 %v349_v22, %v136_v42  ;;  %v3515_v42 = vmov 0.0  }
 0x135   :  { %3514 = vst [vmem:[#allocation39_spill] sm:$0xff] %v2890_v62 }
 0x13b   :  { %v2319_v48 = vpop.eup %2318 }
 0x13c   :  { %v586_v56 = vadd.f32 1.0, %v2319_v48 }
 0x13d   :  { %v2321_v24 = vpop.eup %2320 }
 0x13e   :  { %2322 = vrcp.f32 %v586_v56  ;;  %v593_v9 = vadd.f32 1.0, %v2321_v24  ;;  %v3519_v24 = vld [vmem:[#allocation17_spill] sm:$0xff] }
 0x140   :  { %2324 = vrcp.f32 %v593_v9 }
 0x142   :  { %v578_v3 = vpop.f32.mrf.mxu1 }
 0x143   :  { %v596_v41 = vadd.f32 %v2895_v25, %v578_v3  ;;  %v3520_v3 = vld [vmem:[#allocation19_spill] sm:$0xff] }
 0x144   :  { %v2062_v45 = vpop.f32.mrf.mxu1 }
 0x145   :  { %v3521_v45 = vld [vmem:[#allocation14_spill] sm:$0xff] }
 0x14b   :  { %v2323_v40 = vpop.eup %2322 }
 0x14c   :  { %v597_v43 = vmul.f32 %v2323_v40, %v596_v41  ;;  %v3522_v40 = vld [vmem:[#allocation20_spill] sm:$0xff] }
 0x14d   :  { %v2325_v11 = vpop.eup %2324 }
 0x14e   :  { %v598_v22 = vadd.f32 %v597_v43, %v320_v50  ;;  %v600_v48 = vsub.f32 1.0, %v2325_v11  ;;  %v602_v62 = vmul.f32 0.0, %v2325_v11 }
 0x150   :  { %2326 = vtanh.f32 %v598_v22 }
 0x15d   :  { %v2327_v56 = vpop.eup %2326 }
 0x15e   :  { %v601_v5 = vmul.f32 %v2327_v56, %v600_v48  ;;  %v3523_v48 = vld [vmem:[#allocation21_spill] sm:$0xff] }
 0x160   :  { %v2898_v54 = vadd.f32 %v602_v62, %v601_v5  ;;  %v3517_v5 = vld [vmem:[#allocation18_spill] sm:$0xff]  ;;  %v3518_v62 = vld [vmem:[#allocation16_spill] sm:$0xff] }
 0x162   :  { %604 = vst [vmem:[#allocation10] sm:$0xff] %v2898_v54  ;;  %674 = vmatmul.mubr.f32.vlgmr.msra.gmra.mxu0 %v2898_v54  ;;  %2096 = vmatmul.mubr.f32.vlgmr.msra.gmra.mxu1 %v2898_v54 }
 0x163   :  { %779 = vmatpush1.msra.mxu0 %v2590_v46  ;;  %2099 = vmatpush3.msra.mxu1 %v2690_v21 }
 0x164   :  { %780 = vmatprep.subr.mxu0 %v2592_v47  ;;  %2100 = vmatprep.subr.mxu1 %v3515_v42 }
 0x165   :  { %781 = vmatpush1.msra.mxu0 %v2596_v49  ;;  %2101 = vmatpush3.msra.mxu1 %v2707_v27 }
 0x166   :  { %782 = vmatprep.subr.mxu0 %v2602_v51  ;;  %2102 = vmatprep.subr.mxu1 %v3515_v42 }
 0x167   :  { %783 = vmatpush1.msra.mxu0 %v2605_v52  ;;  %2103 = vmatpush3.msra.mxu1 %v2713_v28 }
 0x168   :  { %784 = vmatprep.subr.mxu0 %v2608_v53  ;;  %2104 = vmatprep.subr.mxu1 %v3515_v42 }
 0x169   :  { %785 = vmatpush1.msra.mxu0 %v2612_v55  ;;  %2105 = vmatpush3.msra.mxu1 %v2719_v29 }
 0x16a   :  { %786 = vmatprep.subr.mxu0 %v2618_v57  ;;  %2106 = vmatprep.subr.mxu1 %v3515_v42 }
 0x16b   :  { %787 = vmatpush1.msra.mxu0 %v2621_v58  ;;  %2107 = vmatpush3.msra.mxu1 %v2724_v30 }
 0x16c   :  { %788 = vmatprep.subr.mxu0 %v2624_v59  ;;  %2108 = vmatprep.subr.mxu1 %v3515_v42 }
 0x16d   :  { %789 = vmatpush1.msra.mxu0 %v2628_v61  ;;  %2109 = vmatpush3.msra.mxu1 %v2730_v31 }
 0x16e   :  { %790 = vmatprep.subr.mxu0 %v2634_v63  ;;  %2110 = vmatprep.subr.mxu1 %v3515_v42 }
 0x16f   :  { %791 = vmatpush1.msra.mxu0 %v2637_v1  ;;  %2111 = vmatpush3.msra.mxu1 %v2736_v32 }
 0x170   :  { %792 = vmatprep.subr.mxu0 %v2640_v2  ;;  %2112 = vmatprep.subr.mxu1 %v3515_v42 }
 0x171   :  { %793 = vmatpush1.msra.mxu0 %v2644_v4  ;;  %2113 = vmatpush3.msra.mxu1 %v2740_v33 }
 0x172   :  { %794 = vmatprep.subr.mxu0 %v2650_v6  ;;  %2114 = vmatprep.subr.mxu1 %v3515_v42 }
 0x173   :  { %795 = vmatpush1.msra.mxu0 %v2653_v7  ;;  %2115 = vmatpush3.msra.mxu1 %v2746_v34 }
 0x174   :  { %796 = vmatprep.subr.mxu0 %v2656_v8  ;;  %2116 = vmatprep.subr.mxu1 %v3515_v42 }
 0x175   :  { %797 = vmatpush1.msra.mxu0 %v2660_v10  ;;  %2117 = vmatpush3.msra.mxu1 %v2752_v35 }
 0x176   :  { %798 = vmatprep.subr.mxu0 %v2664_v12  ;;  %2118 = vmatprep.subr.mxu1 %v3515_v42 }
 0x177   :  { %799 = vmatpush1.msra.mxu0 %v2667_v13  ;;  %2119 = vmatpush3.msra.mxu1 %v2758_v36 }
 0x178   :  { %800 = vmatprep.subr.mxu0 %v2670_v14  ;;  %2120 = vmatprep.subr.mxu1 %v3515_v42 }
 0x179   :  { %801 = vmatpush1.msra.mxu0 %v2673_v15  ;;  %2121 = vmatpush3.msra.mxu1 %v2764_v37 }
 0x17a   :  { %802 = vmatprep.subr.mxu0 %v2677_v17  ;;  %2122 = vmatprep.subr.mxu1 %v3515_v42 }
 0x17b   :  { %803 = vmatpush1.msra.mxu0 %v2680_v18  ;;  %2123 = vmatpush3.msra.mxu1 %v2770_v38 }
 0x17c   :  { %804 = vmatprep.subr.mxu0 %v2684_v19  ;;  %2124 = vmatprep.subr.mxu1 %v3515_v42 }
 0x17d   :  { %805 = vmatpush1.msra.mxu0 %v2688_v20  ;;  %2125 = vmatpush3.msra.mxu1 %v2776_v39 }
 0x17e   :  { %806 = vmatprep.subr.mxu0 %v2694_v23  ;;  %2126 = vmatprep.subr.mxu1 %v3515_v42 }
 0x17f   :  { %807 = vmatpush1.msra.mxu0 %v3516_v16  ;;  %2127 = vmatpush3.msra.mxu1 %v3517_v5 }
 0x180   :  { %808 = vmatprep.subr.mxu0 %v3518_v62  ;;  %2128 = vmatprep.subr.mxu1 %v3515_v42 }
 0x181   :  { %809 = vmatpush1.msra.mxu0 %v3519_v24  ;;  %842 = vmatprep.mubr.f32.mxu0 %v3515_v42 }
 0x182   :  { %2129 = vmatpush3.msra.mxu1 %v3520_v3  ;;  %2130 = vmatprep.mubr.msk.f32.mxu1 %vm2541_vm0, %v3515_v42 }
 0x183   :  { %947 = vmatprep.subr.mxu0 %v3521_v45  ;;  %2133 = vmatprep.subr.mxu1 %v3515_v42 }
 0x222   :  { %v675_v9 = vpop.f32.mrf.mxu0  ;;  %v746_v41 = vpop.f32.mrf.mxu1 }
 0x223   :  { %v750_v50 = vadd.f32 %v675_v9, %v3522_v40  ;;  %v764_v45 = vadd.f32 %v2895_v25, %v746_v41 }
 0x224   :  { %v2097_v43 = vpop.f32.mrf.mxu1  ;;  %v677_v11 = vpop.f32.mrf.mxu0 }
 0x225   :  { %v1810_v22 = vmul.f32 -1.442695, %v750_v50  ;;  %v757_v56 = vadd.f32 %v677_v11, %v3523_v48 }
 0x227   :  { %2328 = vpow2.f32 %v1810_v22  ;;  %v1811_v60 = vmul.f32 -1.442695, %v757_v56  ;;  %v3530_v56 = vld [vmem:[#allocation23_spill] sm:$0xff] }
 0x229   :  { %2330 = vpow2.f32 %v1811_v60 }
 0x234   :  { %v2329_v0 = vpop.eup %2328 }
 0x235   :  { %v754_v26 = vadd.f32 1.0, %v2329_v0  ;;  %v3527_v0 = vld [vmem:[#allocation19_spill] sm:$0xff] }
 0x236   :  { %v2331_v3 = vpop.eup %2330 }
 0x237   :  { %2332 = vrcp.f32 %v754_v26  ;;  %v761_v24 = vadd.f32 1.0, %v2331_v3  ;;  %v3528_v26 = vld [vmem:[#allocation14_spill] sm:$0xff] }
 0x239   :  { %2334 = vrcp.f32 %v761_v24  ;;  %v3529_v24 = vld [vmem:[#allocation22_spill] sm:$0xff] }
 0x244   :  { %v2333_v62 = vpop.eup %2332 }
 0x245   :  { %v765_v5 = vmul.f32 %v2333_v62, %v764_v45 }
 0x246   :  { %v2335_v40 = vpop.eup %2334 }
 0x247   :  { %v766_v9 = vadd.f32 %v765_v5, %v2874_v44  ;;  %v768_v50 = vsub.f32 1.0, %v2335_v40  ;;  %v770_v11 = vmul.f32 %v2335_v40, %v2898_v54  ;;  %v3525_v44 = vld [vmem:[#allocation16_spill] sm:$0xff]  ;;  %v3526_v54 = vld [vmem:[#allocation17_spill] sm:$0xff] }
 0x249   :  { %2336 = vtanh.f32 %v766_v9 }
 0x256   :  { %v2337_v43 = vpop.eup %2336 }
 0x257   :  { %v769_v22 = vmul.f32 %v2337_v43, %v768_v50 }
 0x259   :  { %v2975_v60 = vadd.f32 %v770_v11, %v769_v22 }
 0x25b   :  { %773 = vst [vmem:[#allocation10 + $0x8] sm:$0xff] %v2975_v60  ;;  %843 = vmatmul.mubr.f32.vlgmr.msra.gmra.mxu0 %v2975_v60  ;;  %2131 = vmatmul.mubr.f32.vlgmr.msra.gmra.mxu1 %v2975_v60 }
 0x25c   :  { %948 = vmatpush1.msra.mxu0 %v2590_v46  ;;  %2134 = vmatpush3.msra.mxu1 %v2690_v21  ;;  %v3524_v46 = vld [vmem:[#allocation18_spill] sm:$0xff] }
 0x25d   :  { %949 = vmatprep.subr.mxu0 %v2592_v47  ;;  %2135 = vmatprep.subr.mxu1 %v3515_v42 }
 0x25e   :  { %950 = vmatpush1.msra.mxu0 %v2596_v49  ;;  %2136 = vmatpush3.msra.mxu1 %v2707_v27 }
 0x25f   :  { %951 = vmatprep.subr.mxu0 %v2602_v51  ;;  %2137 = vmatprep.subr.mxu1 %v3515_v42 }
 0x260   :  { %952 = vmatpush1.msra.mxu0 %v2605_v52  ;;  %2138 = vmatpush3.msra.mxu1 %v2713_v28 }
 0x261   :  { %953 = vmatprep.subr.mxu0 %v2608_v53  ;;  %2139 = vmatprep.subr.mxu1 %v3515_v42 }
 0x262   :  { %954 = vmatpush1.msra.mxu0 %v2612_v55  ;;  %2140 = vmatpush3.msra.mxu1 %v2719_v29 }
 0x263   :  { %955 = vmatprep.subr.mxu0 %v2618_v57  ;;  %2141 = vmatprep.subr.mxu1 %v3515_v42 }
 0x264   :  { %956 = vmatpush1.msra.mxu0 %v2621_v58  ;;  %2142 = vmatpush3.msra.mxu1 %v2724_v30 }
 0x265   :  { %957 = vmatprep.subr.mxu0 %v2624_v59  ;;  %2143 = vmatprep.subr.mxu1 %v3515_v42 }
 0x266   :  { %958 = vmatpush1.msra.mxu0 %v2628_v61  ;;  %2144 = vmatpush3.msra.mxu1 %v2730_v31 }
 0x267   :  { %959 = vmatprep.subr.mxu0 %v2634_v63  ;;  %2145 = vmatprep.subr.mxu1 %v3515_v42 }
 0x268   :  { %960 = vmatpush1.msra.mxu0 %v2637_v1  ;;  %2146 = vmatpush3.msra.mxu1 %v2736_v32 }
 0x269   :  { %961 = vmatprep.subr.mxu0 %v2640_v2  ;;  %2147 = vmatprep.subr.mxu1 %v3515_v42 }
 0x26a   :  { %962 = vmatpush1.msra.mxu0 %v2644_v4  ;;  %2148 = vmatpush3.msra.mxu1 %v2740_v33 }
 0x26b   :  { %963 = vmatprep.subr.mxu0 %v2650_v6  ;;  %2149 = vmatprep.subr.mxu1 %v3515_v42 }
 0x26c   :  { %964 = vmatpush1.msra.mxu0 %v2653_v7  ;;  %2150 = vmatpush3.msra.mxu1 %v2746_v34 }
 0x26d   :  { %965 = vmatprep.subr.mxu0 %v2656_v8  ;;  %2151 = vmatprep.subr.mxu1 %v3515_v42 }
 0x26e   :  { %966 = vmatpush1.msra.mxu0 %v2660_v10  ;;  %2152 = vmatpush3.msra.mxu1 %v2752_v35 }
 0x26f   :  { %967 = vmatprep.subr.mxu0 %v2664_v12  ;;  %2153 = vmatprep.subr.mxu1 %v3515_v42 }
 0x270   :  { %968 = vmatpush1.msra.mxu0 %v2667_v13  ;;  %2154 = vmatpush3.msra.mxu1 %v2758_v36 }
 0x271   :  { %969 = vmatprep.subr.mxu0 %v2670_v14  ;;  %2155 = vmatprep.subr.mxu1 %v3515_v42 }
 0x272   :  { %970 = vmatpush1.msra.mxu0 %v2673_v15  ;;  %2156 = vmatpush3.msra.mxu1 %v2764_v37 }
 0x273   :  { %971 = vmatprep.subr.mxu0 %v2677_v17  ;;  %2157 = vmatprep.subr.mxu1 %v3515_v42 }
 0x274   :  { %972 = vmatpush1.msra.mxu0 %v2680_v18  ;;  %2158 = vmatpush3.msra.mxu1 %v2770_v38 }
 0x275   :  { %973 = vmatprep.subr.mxu0 %v2684_v19  ;;  %2159 = vmatprep.subr.mxu1 %v3515_v42 }
 0x276   :  { %974 = vmatpush1.msra.mxu0 %v2688_v20  ;;  %2160 = vmatpush3.msra.mxu1 %v2776_v39 }
 0x277   :  { %975 = vmatprep.subr.mxu0 %v2694_v23  ;;  %2161 = vmatprep.subr.mxu1 %v3515_v42 }
 0x278   :  { %976 = vmatpush1.msra.mxu0 %v3516_v16  ;;  %2162 = vmatpush3.msra.mxu1 %v3524_v46 }
 0x279   :  { %977 = vmatprep.subr.mxu0 %v3525_v44  ;;  %2163 = vmatprep.subr.mxu1 %v3515_v42  ;;  %v3531_v44 = vld [vmem:[#allocation35_spill] sm:$0xff] }
 0x27a   :  { %978 = vmatpush1.msra.mxu0 %v3526_v54  ;;  %1011 = vmatprep.mubr.f32.mxu0 %v3515_v42 }
 0x27b   :  { %2164 = vmatpush3.msra.mxu1 %v3527_v0  ;;  %2165 = vmatprep.mubr.msk.f32.mxu1 %vm2541_vm0, %v3515_v42 }
 0x27c   :  { %1116 = vmatprep.subr.mxu0 %v3528_v26  ;;  %2168 = vmatprep.subr.mxu1 %v3515_v42 }
 0x31b   :  { %v844_v5 = vpop.f32.mrf.mxu0  ;;  %v915_v62 = vpop.f32.mrf.mxu1 }
 0x31c   :  { %v919_v3 = vadd.f32 %v844_v5, %v3529_v24  ;;  %v933_v26 = vadd.f32 %v2895_v25, %v915_v62  ;;  %v3057_v62 = vld [vmem:[#allocation9 + $0x168] sm:$0xff] }
 0x31d   :  { %v2132_v45 = vpop.f32.mrf.mxu1  ;;  %v846_v48 = vpop.f32.mrf.mxu0 }
 0x31e   :  { %v1812_v41 = vmul.f32 -1.442695, %v919_v3  ;;  %v926_v9 = vadd.f32 %v846_v48, %v3530_v56 }
 0x320   :  { %2338 = vpow2.f32 %v1812_v41  ;;  %v1813_v40 = vmul.f32 -1.442695, %v926_v9  ;;  %v3154_v9 = vld [vmem:[#allocation9 + $0x138] sm:$0xff] }
 0x322   :  { %2340 = vpow2.f32 %v1813_v40  ;;  %v3158_v40 = vld [vmem:[#allocation9 + $0x128] sm:$0xff] }
 0x32d   :  { %v2339_v50 = vpop.eup %2338 }
 0x32e   :  { %v923_v43 = vadd.f32 1.0, %v2339_v50  ;;  %v3162_v50 = vld [vmem:[#allocation9 + $0x120] sm:$0xff] }
 0x32f   :  { %v2341_v22 = vpop.eup %2340 }
 0x330   :  { %2342 = vrcp.f32 %v923_v43  ;;  %v930_v11 = vadd.f32 1.0, %v2341_v22  ;;  %v3170_v43 = vld [vmem:[#allocation9 + $0x108] sm:$0xff]  ;;  %v3178_v22 = vld [vmem:[#allocation9 + $0xf0] sm:$0xff] }
 0x332   :  { %2344 = vrcp.f32 %v930_v11  ;;  %v3186_v11 = vld [vmem:[#allocation9 + $0xd8] sm:$0xff] }
 0x33d   :  { %v2343_v0 = vpop.eup %2342 }
 0x33e   :  { %v934_v54 = vmul.f32 %v2343_v0, %v933_v26  ;;  %v3150_v0 = vld [vmem:[#allocation9 + $0x140] sm:$0xff] }
 0x33f   :  { %v2345_v24 = vpop.eup %2344  ;;  %v3194_v26 = vld [vmem:[#allocation9 + $0xc0] sm:$0xff] }
 0x340   :  { %v935_v5 = vadd.f32 %v934_v54, %v3531_v44  ;;  %v937_v3 = vsub.f32 1.0, %v2345_v24  ;;  %v939_v48 = vmul.f32 %v2345_v24, %v2975_v60  ;;  %v3139_v60 = vld [vmem:[#allocation9 + $0x178] sm:$0xff]  ;;  %v3146_v54 = vld [vmem:[#allocation9 + $0x150] sm:$0xff] }
 0x341   :  { %v3142_v44 = vld [vmem:[#allocation9 + $0x158] sm:$0xff]  ;;  %v3210_v24 = vld [vmem:[#allocation9 + $0x90] sm:$0xff] }
 0x342   :  { %2346 = vtanh.f32 %v935_v5  ;;  %v3202_v5 = vld [vmem:[#allocation9 + $0xa8] sm:$0xff] }
 0x34f   :  { %v2347_v45 = vpop.eup %2346 }
 0x350   :  { %v938_v41 = vmul.f32 %v2347_v45, %v937_v3  ;;  %v3218_v3 = vld [vmem:[#allocation9 + $0x78] sm:$0xff]  ;;  %v3226_v45 = vld [vmem:[#allocation9 + $0x60] sm:$0xff] }
 0x352   :  { %v3052_v56 = vadd.f32 %v939_v48, %v938_v41  ;;  %v3234_v41 = vld [vmem:[#allocation9 + $0x48] sm:$0xff]  ;;  %v3242_v48 = vld [vmem:[#allocation9 + $0x30] sm:$0xff] }
 0x354   :  { %942 = vst [vmem:[#allocation10 + $0x10] sm:$0xff] %v3052_v56  ;;  %1012 = vmatmul.mubr.f32.vlgmr.msra.gmra.mxu0 %v3052_v56  ;;  %2166 = vmatmul.mubr.f32.vlgmr.msra.gmra.mxu1 %v3052_v56 }
 0x355   :  { %1117 = vmatpush1.msra.mxu0 %v3057_v62  ;;  %2169 = vmatpush3.msra.mxu1 %v2690_v21 }
 0x356   :  { %1118 = vmatprep.subr.mxu0 %v2592_v47  ;;  %2170 = vmatprep.subr.mxu1 %v3515_v42  ;;  %v3532_v47 = vld [vmem:[#allocation16_spill] sm:$0xff] }
 0x357   :  { %1119 = vmatpush1.msra.mxu0 %v2596_v49  ;;  %2171 = vmatpush3.msra.mxu1 %v2707_v27  ;;  %v3533_v49 = vld [vmem:[#allocation17_spill] sm:$0xff] }
 0x358   :  { %1120 = vmatprep.subr.mxu0 %v2602_v51  ;;  %2172 = vmatprep.subr.mxu1 %v3515_v42  ;;  %v3534_v51 = vld [vmem:[#allocation19_spill] sm:$0xff] }
 0x359   :  { %1121 = vmatpush1.msra.mxu0 %v2605_v52  ;;  %2173 = vmatpush3.msra.mxu1 %v2713_v28  ;;  %v3124_v52 = vld [vmem:[#allocation9 + $0x170] sm:$0xff] }
 0x35a   :  { %1122 = vmatprep.subr.mxu0 %v2608_v53  ;;  %2174 = vmatprep.subr.mxu1 %v3515_v42 }
 0x35b   :  { %1123 = vmatpush1.msra.mxu0 %v2612_v55  ;;  %2175 = vmatpush3.msra.mxu1 %v2719_v29 }
 0x35c   :  { %1124 = vmatprep.subr.mxu0 %v2618_v57  ;;  %2176 = vmatprep.subr.mxu1 %v3515_v42  ;;  %v3535_v57 = vld [vmem:[#allocation24_spill] sm:$0xff] }
 0x35d   :  { %1125 = vmatpush1.msra.mxu0 %v2621_v58  ;;  %2177 = vmatpush3.msra.mxu1 %v2724_v30 }
 0x35e   :  { %1126 = vmatprep.subr.mxu0 %v2624_v59  ;;  %2178 = vmatprep.subr.mxu1 %v3515_v42 }
 0x35f   :  { %1127 = vmatpush1.msra.mxu0 %v2628_v61  ;;  %2179 = vmatpush3.msra.mxu1 %v2730_v31 }
 0x360   :  { %1128 = vmatprep.subr.mxu0 %v2634_v63  ;;  %2180 = vmatprep.subr.mxu1 %v3515_v42 }
 0x361   :  { %1129 = vmatpush1.msra.mxu0 %v2637_v1  ;;  %2181 = vmatpush3.msra.mxu1 %v2736_v32  ;;  %v3536_v1 = vld [vmem:[#allocation25_spill] sm:$0xff] }
 0x362   :  { %1130 = vmatprep.subr.mxu0 %v2640_v2  ;;  %2182 = vmatprep.subr.mxu1 %v3515_v42 }
 0x363   :  { %1131 = vmatpush1.msra.mxu0 %v2644_v4  ;;  %2183 = vmatpush3.msra.mxu1 %v2740_v33 }
 0x364   :  { %1132 = vmatprep.subr.mxu0 %v2650_v6  ;;  %2184 = vmatprep.subr.mxu1 %v3515_v42 }
 0x365   :  { %1133 = vmatpush1.msra.mxu0 %v2653_v7  ;;  %2185 = vmatpush3.msra.mxu1 %v2746_v34 }
 0x366   :  { %1134 = vmatprep.subr.mxu0 %v2656_v8  ;;  %2186 = vmatprep.subr.mxu1 %v3515_v42 }
 0x367   :  { %1135 = vmatpush1.msra.mxu0 %v2660_v10  ;;  %2187 = vmatpush3.msra.mxu1 %v2752_v35 }
 0x368   :  { %1136 = vmatprep.subr.mxu0 %v2664_v12  ;;  %2188 = vmatprep.subr.mxu1 %v3515_v42 }
 0x369   :  { %1137 = vmatpush1.msra.mxu0 %v2667_v13  ;;  %2189 = vmatpush3.msra.mxu1 %v2758_v36 }
 0x36a   :  { %1138 = vmatprep.subr.mxu0 %v2670_v14  ;;  %2190 = vmatprep.subr.mxu1 %v3515_v42 }
 0x36b   :  { %1139 = vmatpush1.msra.mxu0 %v2673_v15  ;;  %2191 = vmatpush3.msra.mxu1 %v2764_v37  ;;  %v3537_v15 = vld [vmem:[#allocation34_spill] sm:$0xff] }
 0x36c   :  { %1140 = vmatprep.subr.mxu0 %v2677_v17  ;;  %2192 = vmatprep.subr.mxu1 %v3515_v42 }
 0x36d   :  { %1141 = vmatpush1.msra.mxu0 %v2680_v18  ;;  %2193 = vmatpush3.msra.mxu1 %v2770_v38 }
 0x36e   :  { %1142 = vmatprep.subr.mxu0 %v2684_v19  ;;  %2194 = vmatprep.subr.mxu1 %v3515_v42 }
 0x36f   :  { %1143 = vmatpush1.msra.mxu0 %v2688_v20  ;;  %2195 = vmatpush3.msra.mxu1 %v2776_v39 }
 0x370   :  { %1144 = vmatprep.subr.mxu0 %v2694_v23  ;;  %2196 = vmatprep.subr.mxu1 %v3515_v42 }
 0x371   :  { %1145 = vmatpush1.msra.mxu0 %v3516_v16  ;;  %2197 = vmatpush3.msra.mxu1 %v3524_v46 }
 0x372   :  { %1146 = vmatprep.subr.mxu0 %v3532_v47  ;;  %2198 = vmatprep.subr.mxu1 %v3515_v42  ;;  %v3258_v47 = vld [vmem:[#allocation9] sm:$0xff] }
 0x373   :  { %1147 = vmatpush1.msra.mxu0 %v3533_v49  ;;  %1180 = vmatprep.mubr.f32.mxu0 %v3515_v42  ;;  %3539 = vst [vmem:[#allocation20_spill] sm:$0xff] %v3258_v47  ;;  %v3540_v49 = vld [vmem:[#allocation26_spill] sm:$0xff] }
 0x374   :  { %2199 = vmatpush3.msra.mxu1 %v3534_v51  ;;  %2200 = vmatprep.mubr.msk.f32.mxu1 %vm2541_vm0, %v3515_v42 }
 0x375   :  { %1285 = vmatprep.subr.mxu0 %v3124_v52  ;;  %2203 = vmatprep.subr.mxu1 %v3515_v42 }
 0x414   :  { %v1013_v53 = vpop.f32.mrf.mxu0  ;;  %v1084_v55 = vpop.f32.mrf.mxu1 }
 0x415   :  { %v1088_v58 = vadd.f32 %v1013_v53, %v3535_v57  ;;  %v1102_v12 = vadd.f32 %v2895_v25, %v1084_v55 }
 0x416   :  { %v2167_v59 = vpop.f32.mrf.mxu1  ;;  %v1015_v63 = vpop.f32.mrf.mxu0 }
 0x417   :  { %v1814_v61 = vmul.f32 -1.442695, %v1088_v58  ;;  %v1095_v2 = vadd.f32 %v1015_v63, %v3536_v1  ;;  %v3541_v59 = vld [vmem:[#allocation27_spill] sm:$0xff] }
 0x419   :  { %2348 = vpow2.f32 %v1814_v61  ;;  %v1815_v4 = vmul.f32 -1.442695, %v1095_v2 }
 0x41b   :  { %2350 = vpow2.f32 %v1815_v4 }
 0x426   :  { %v2349_v6 = vpop.eup %2348 }
 0x427   :  { %v1092_v7 = vadd.f32 1.0, %v2349_v6 }
 0x428   :  { %v2351_v8 = vpop.eup %2350 }
 0x429   :  { %2352 = vrcp.f32 %v1092_v7  ;;  %v1099_v10 = vadd.f32 1.0, %v2351_v8 }
 0x42b   :  { %2354 = vrcp.f32 %v1099_v10  ;;  %v3542_v10 = vld [vmem:[#allocation37_spill] sm:$0xff] }
 0x436   :  { %v2353_v13 = vpop.eup %2352 }
 0x437   :  { %v1103_v14 = vmul.f32 %v2353_v13, %v1102_v12 }
 0x438   :  { %v2355_v18 = vpop.eup %2354 }
 0x439   :  { %v1104_v17 = vadd.f32 %v1103_v14, %v3537_v15  ;;  %v1106_v19 = vsub.f32 1.0, %v2355_v18  ;;  %v1108_v23 = vmul.f32 %v2355_v18, %v3052_v56  ;;  %v3250_v56 = vld [vmem:[#allocation9 + $0x18] sm:$0xff] }
 0x43b   :  { %2356 = vtanh.f32 %v1104_v17 }
 0x448   :  { %v2357_v20 = vpop.eup %2356 }
 0x449   :  { %v1107_v21 = vmul.f32 %v2357_v20, %v1106_v19  ;;  %v3282_v20 = vld [vmem:[#allocation9 + $0x160] sm:$0xff] }
 0x44b   :  { %v3133_v16 = vadd.f32 %v1108_v23, %v1107_v21  ;;  %v3288_v21 = vld [vmem:[#allocation9 + $0x148] sm:$0xff]  ;;  %v3294_v23 = vld [vmem:[#allocation9 + $0x130] sm:$0xff] }
 0x44d   :  { %1111 = vst [vmem:[#allocation10 + $0x18] sm:$0xff] %v3133_v16  ;;  %1181 = vmatmul.mubr.f32.vlgmr.msra.gmra.mxu0 %v3133_v16  ;;  %2201 = vmatmul.mubr.f32.vlgmr.msra.gmra.mxu1 %v3133_v16 }
 0x44e   :  { %1286 = vmatpush1.msra.mxu0 %v3057_v62  ;;  %2204 = vmatpush3.msra.mxu1 %v3139_v60 }
 0x44f   :  { %1287 = vmatprep.subr.mxu0 %v3142_v44  ;;  %2205 = vmatprep.subr.mxu1 %v3515_v42 }
 0x450   :  { %1288 = vmatpush1.msra.mxu0 %v3146_v54  ;;  %2206 = vmatpush3.msra.mxu1 %v2707_v27  ;;  %v3166_v27 = vld [vmem:[#allocation9 + $0x110] sm:$0xff] }
 0x451   :  { %1289 = vmatprep.subr.mxu0 %v3150_v0  ;;  %2207 = vmatprep.subr.mxu1 %v3515_v42 }
 0x452   :  { %1290 = vmatpush1.msra.mxu0 %v3154_v9  ;;  %2208 = vmatpush3.msra.mxu1 %v2713_v28  ;;  %v3174_v28 = vld [vmem:[#allocation9 + $0xf8] sm:$0xff] }
 0x453   :  { %1291 = vmatprep.subr.mxu0 %v3158_v40  ;;  %2209 = vmatprep.subr.mxu1 %v3515_v42 }
 0x454   :  { %1292 = vmatpush1.msra.mxu0 %v3162_v50  ;;  %2210 = vmatpush3.msra.mxu1 %v2719_v29  ;;  %v3182_v29 = vld [vmem:[#allocation9 + $0xe0] sm:$0xff] }
 0x455   :  { %1293 = vmatprep.subr.mxu0 %v3166_v27  ;;  %2211 = vmatprep.subr.mxu1 %v3515_v42 }
 0x456   :  { %1294 = vmatpush1.msra.mxu0 %v3170_v43  ;;  %2212 = vmatpush3.msra.mxu1 %v2724_v30  ;;  %v3190_v30 = vld [vmem:[#allocation9 + $0xc8] sm:$0xff] }
 0x457   :  { %1295 = vmatprep.subr.mxu0 %v3174_v28  ;;  %2213 = vmatprep.subr.mxu1 %v3515_v42 }
 0x458   :  { %1296 = vmatpush1.msra.mxu0 %v3178_v22  ;;  %2214 = vmatpush3.msra.mxu1 %v2730_v31  ;;  %v3198_v31 = vld [vmem:[#allocation9 + $0xb0] sm:$0xff] }
 0x459   :  { %1297 = vmatprep.subr.mxu0 %v3182_v29  ;;  %2215 = vmatprep.subr.mxu1 %v3515_v42 }
 0x45a   :  { %1298 = vmatpush1.msra.mxu0 %v3186_v11  ;;  %2216 = vmatpush3.msra.mxu1 %v2736_v32  ;;  %v3206_v32 = vld [vmem:[#allocation9 + $0x98] sm:$0xff] }
 0x45b   :  { %1299 = vmatprep.subr.mxu0 %v3190_v30  ;;  %2217 = vmatprep.subr.mxu1 %v3515_v42 }
 0x45c   :  { %1300 = vmatpush1.msra.mxu0 %v3194_v26  ;;  %2218 = vmatpush3.msra.mxu1 %v2740_v33  ;;  %v3214_v33 = vld [vmem:[#allocation9 + $0x80] sm:$0xff] }
 0x45d   :  { %1301 = vmatprep.subr.mxu0 %v3198_v31  ;;  %2219 = vmatprep.subr.mxu1 %v3515_v42 }
 0x45e   :  { %1302 = vmatpush1.msra.mxu0 %v3202_v5  ;;  %2220 = vmatpush3.msra.mxu1 %v2746_v34  ;;  %v3222_v34 = vld [vmem:[#allocation9 + $0x68] sm:$0xff] }
 0x45f   :  { %1303 = vmatprep.subr.mxu0 %v3206_v32  ;;  %2221 = vmatprep.subr.mxu1 %v3515_v42 }
 0x460   :  { %1304 = vmatpush1.msra.mxu0 %v3210_v24  ;;  %2222 = vmatpush3.msra.mxu1 %v2752_v35  ;;  %v3230_v35 = vld [vmem:[#allocation9 + $0x50] sm:$0xff] }
 0x461   :  { %1305 = vmatprep.subr.mxu0 %v3214_v33  ;;  %2223 = vmatprep.subr.mxu1 %v3515_v42 }
 0x462   :  { %1306 = vmatpush1.msra.mxu0 %v3218_v3  ;;  %2224 = vmatpush3.msra.mxu1 %v2758_v36  ;;  %v3238_v36 = vld [vmem:[#allocation9 + $0x38] sm:$0xff] }
 0x463   :  { %1307 = vmatprep.subr.mxu0 %v3222_v34  ;;  %2225 = vmatprep.subr.mxu1 %v3515_v42 }
 0x464   :  { %1308 = vmatpush1.msra.mxu0 %v3226_v45  ;;  %2226 = vmatpush3.msra.mxu1 %v2764_v37  ;;  %v3246_v37 = vld [vmem:[#allocation9 + $0x20] sm:$0xff] }
 0x465   :  { %1309 = vmatprep.subr.mxu0 %v3230_v35  ;;  %2227 = vmatprep.subr.mxu1 %v3515_v42 }
 0x466   :  { %1310 = vmatpush1.msra.mxu0 %v3234_v41  ;;  %2228 = vmatpush3.msra.mxu1 %v2770_v38  ;;  %v3254_v38 = vld [vmem:[#allocation9 + $0x8] sm:$0xff] }
 0x467   :  { %1311 = vmatprep.subr.mxu0 %v3238_v36  ;;  %2229 = vmatprep.subr.mxu1 %v3515_v42  ;;  %3538 = vst [vmem:[#allocation15_spill] sm:$0xff] %v3254_v38 }
 0x468   :  { %1312 = vmatpush1.msra.mxu0 %v3242_v48  ;;  %2230 = vmatpush3.msra.mxu1 %v2776_v39 }
 0x469   :  { %1313 = vmatprep.subr.mxu0 %v3246_v37  ;;  %2231 = vmatprep.subr.mxu1 %v3515_v42 }
 0x46a   :  { %1314 = vmatpush1.msra.mxu0 %v3250_v56  ;;  %2232 = vmatpush3.msra.mxu1 %v3524_v46 }
 0x46b   :  { %1315 = vmatprep.subr.mxu0 %v3254_v38  ;;  %2233 = vmatprep.subr.mxu1 %v3515_v42 }
 0x46c   :  { %1316 = vmatpush1.msra.mxu0 %v3258_v47  ;;  %1349 = vmatprep.mubr.f32.mxu0 %v3515_v42 }
 0x46d   :  { %2234 = vmatpush3.msra.mxu1 %v3534_v51  ;;  %2235 = vmatprep.mubr.msk.f32.mxu1 %vm2541_vm0, %v3515_v42 }
 0x46e   :  { %1454 = vmatprep.subr.mxu0 %v3124_v52  ;;  %2238 = vmatprep.subr.mxu1 %v3515_v42 }
 0x50d   :  { %v1182_v39 = vpop.f32.mrf.mxu0  ;;  %v1253_v46 = vpop.f32.mrf.mxu1 }
 0x50e   :  { %v1257_v53 = vadd.f32 %v1182_v39, %v3540_v49  ;;  %v1271_v6 = vadd.f32 %v2895_v25, %v1253_v46  ;;  %v3306_v39 = vld [vmem:[#allocation9 + $0x100] sm:$0xff]  ;;  %v3312_v46 = vld [vmem:[#allocation9 + $0xe8] sm:$0xff]  ;;  %v3318_v49 = vld [vmem:[#allocation9 + $0xd0] sm:$0xff] }
 0x50f   :  { %v2202_v55 = vpop.f32.mrf.mxu1  ;;  %v1184_v58 = vpop.f32.mrf.mxu0 }
 0x510   :  { %v1816_v57 = vmul.f32 -1.442695, %v1257_v53  ;;  %v1264_v61 = vadd.f32 %v1184_v58, %v3541_v59  ;;  %v3324_v53 = vld [vmem:[#allocation9 + $0xb8] sm:$0xff]  ;;  %v3330_v55 = vld [vmem:[#allocation9 + $0xa0] sm:$0xff]  ;;  %v3342_v58 = vld [vmem:[#allocation9 + $0x70] sm:$0xff] }
 0x511   :  { %v3348_v59 = vld [vmem:[#allocation9 + $0x58] sm:$0xff] }
 0x512   :  { %2358 = vpow2.f32 %v1816_v57  ;;  %v1817_v63 = vmul.f32 -1.442695, %v1264_v61  ;;  %v3336_v57 = vld [vmem:[#allocation9 + $0x88] sm:$0xff]  ;;  %v3354_v61 = vld [vmem:[#allocation9 + $0x40] sm:$0xff] }
 0x514   :  { %2360 = vpow2.f32 %v1817_v63  ;;  %v3360_v63 = vld [vmem:[#allocation9 + $0x28] sm:$0xff] }
 0x515   :  { %3543 = vst [vmem:[#allocation21_spill] sm:$0xff] %v3360_v63 }
 0x51f   :  { %v2359_v51 = vpop.eup %2358 }
 0x520   :  { %v1261_v1 = vadd.f32 1.0, %v2359_v51  ;;  %v3367_v51 = vld [vmem:[#allocation9 + $0x10] sm:$0xff] }
 0x521   :  { %v2361_v2 = vpop.eup %2360  ;;  %3544 = vst [vmem:[#allocation18_spill] sm:$0xff] %v3367_v51 }
 0x522   :  { %2362 = vrcp.f32 %v1261_v1  ;;  %v1268_v4 = vadd.f32 1.0, %v2361_v2 }
 0x524   :  { %2364 = vrcp.f32 %v1268_v4  ;;  %v3545_v4 = vld [vmem:[#allocation28_spill] sm:$0xff] }
 0x52f   :  { %v2363_v7 = vpop.eup %2362 }
 0x530   :  { %v1272_v8 = vmul.f32 %v2363_v7, %v1271_v6 }
 0x531   :  { %v2365_v13 = vpop.eup %2364 }
 0x532   :  { %v1273_v12 = vadd.f32 %v1272_v8, %v3542_v10  ;;  %v1275_v14 = vsub.f32 1.0, %v2365_v13  ;;  %v1277_v18 = vmul.f32 %v2365_v13, %v3133_v16  ;;  %v3300_v16 = vld [vmem:[#allocation9 + $0x118] sm:$0xff] }
 0x534   :  { %2366 = vtanh.f32 %v1273_v12  ;;  %v3546_v12 = vld [vmem:[#allocation29_spill] sm:$0xff] }
 0x541   :  { %v2367_v15 = vpop.eup %2366 }
 0x542   :  { %v1276_v17 = vmul.f32 %v2367_v15, %v1275_v14 }
 0x544   :  { %v3272_v19 = vadd.f32 %v1277_v18, %v1276_v17 }
 0x546   :  { %1280 = vst [vmem:[#allocation10 + $0x20] sm:$0xff] %v3272_v19  ;;  %1350 = vmatmul.mubr.f32.vlgmr.msra.gmra.mxu0 %v3272_v19  ;;  %2236 = vmatmul.mubr.f32.vlgmr.msra.gmra.mxu1 %v3272_v19 }
 0x547   :  { %1455 = vmatpush1.msra.mxu0 %v3057_v62  ;;  %2239 = vmatpush3.msra.mxu1 %v3139_v60 }
 0x548   :  { %1456 = vmatprep.subr.mxu0 %v3142_v44  ;;  %2240 = vmatprep.subr.mxu1 %v3515_v42 }
 0x549   :  { %1457 = vmatpush1.msra.mxu0 %v3146_v54  ;;  %2241 = vmatpush3.msra.mxu1 %v3282_v20 }
 0x54a   :  { %1458 = vmatprep.subr.mxu0 %v3150_v0  ;;  %2242 = vmatprep.subr.mxu1 %v3515_v42 }
 0x54b   :  { %1459 = vmatpush1.msra.mxu0 %v3154_v9  ;;  %2243 = vmatpush3.msra.mxu1 %v3288_v21 }
 0x54c   :  { %1460 = vmatprep.subr.mxu0 %v3158_v40  ;;  %2244 = vmatprep.subr.mxu1 %v3515_v42 }
 0x54d   :  { %1461 = vmatpush1.msra.mxu0 %v3162_v50  ;;  %2245 = vmatpush3.msra.mxu1 %v3294_v23 }
 0x54e   :  { %1462 = vmatprep.subr.mxu0 %v3166_v27  ;;  %2246 = vmatprep.subr.mxu1 %v3515_v42 }
 0x54f   :  { %1463 = vmatpush1.msra.mxu0 %v3170_v43  ;;  %2247 = vmatpush3.msra.mxu1 %v3300_v16 }
 0x550   :  { %1464 = vmatprep.subr.mxu0 %v3174_v28  ;;  %2248 = vmatprep.subr.mxu1 %v3515_v42 }
 0x551   :  { %1465 = vmatpush1.msra.mxu0 %v3178_v22  ;;  %2249 = vmatpush3.msra.mxu1 %v3306_v39 }
 0x552   :  { %1466 = vmatprep.subr.mxu0 %v3182_v29  ;;  %2250 = vmatprep.subr.mxu1 %v3515_v42 }
 0x553   :  { %1467 = vmatpush1.msra.mxu0 %v3186_v11  ;;  %2251 = vmatpush3.msra.mxu1 %v3312_v46 }
 0x554   :  { %1468 = vmatprep.subr.mxu0 %v3190_v30  ;;  %2252 = vmatprep.subr.mxu1 %v3515_v42 }
 0x555   :  { %1469 = vmatpush1.msra.mxu0 %v3194_v26  ;;  %2253 = vmatpush3.msra.mxu1 %v3318_v49 }
 0x556   :  { %1470 = vmatprep.subr.mxu0 %v3198_v31  ;;  %2254 = vmatprep.subr.mxu1 %v3515_v42 }
 0x557   :  { %1471 = vmatpush1.msra.mxu0 %v3202_v5  ;;  %2255 = vmatpush3.msra.mxu1 %v3324_v53 }
 0x558   :  { %1472 = vmatprep.subr.mxu0 %v3206_v32  ;;  %2256 = vmatprep.subr.mxu1 %v3515_v42 }
 0x559   :  { %1473 = vmatpush1.msra.mxu0 %v3210_v24  ;;  %2257 = vmatpush3.msra.mxu1 %v3330_v55 }
 0x55a   :  { %1474 = vmatprep.subr.mxu0 %v3214_v33  ;;  %2258 = vmatprep.subr.mxu1 %v3515_v42 }
 0x55b   :  { %1475 = vmatpush1.msra.mxu0 %v3218_v3  ;;  %2259 = vmatpush3.msra.mxu1 %v3336_v57 }
 0x55c   :  { %1476 = vmatprep.subr.mxu0 %v3222_v34  ;;  %2260 = vmatprep.subr.mxu1 %v3515_v42 }
 0x55d   :  { %1477 = vmatpush1.msra.mxu0 %v3226_v45  ;;  %2261 = vmatpush3.msra.mxu1 %v3342_v58 }
 0x55e   :  { %1478 = vmatprep.subr.mxu0 %v3230_v35  ;;  %2262 = vmatprep.subr.mxu1 %v3515_v42 }
 0x55f   :  { %1479 = vmatpush1.msra.mxu0 %v3234_v41  ;;  %2263 = vmatpush3.msra.mxu1 %v3348_v59 }
 0x560   :  { %1480 = vmatprep.subr.mxu0 %v3238_v36  ;;  %2264 = vmatprep.subr.mxu1 %v3515_v42 }
 0x561   :  { %1481 = vmatpush1.msra.mxu0 %v3242_v48  ;;  %2265 = vmatpush3.msra.mxu1 %v3354_v61 }
 0x562   :  { %1482 = vmatprep.subr.mxu0 %v3246_v37  ;;  %2266 = vmatprep.subr.mxu1 %v3515_v42 }
 0x563   :  { %1483 = vmatpush1.msra.mxu0 %v3250_v56  ;;  %2267 = vmatpush3.msra.mxu1 %v3360_v63  ;;  %v3547_v63 = vld [vmem:[#allocation36_spill] sm:$0xff] }
 0x564   :  { %1484 = vmatprep.subr.mxu0 %v3254_v38  ;;  %2268 = vmatprep.subr.mxu1 %v3515_v42 }
 0x565   :  { %1485 = vmatpush1.msra.mxu0 %v3258_v47  ;;  %1518 = vmatprep.mubr.f32.mxu0 %v3515_v42 }
 0x566   :  { %2269 = vmatpush3.msra.mxu1 %v3367_v51  ;;  %2270 = vmatprep.mubr.msk.f32.mxu1 %vm2541_vm0, %v3515_v42 }
 0x567   :  { %1623 = vmatprep.subr.mxu0 %v3124_v52  ;;  %2273 = vmatprep.subr.mxu1 %v3515_v42 }
 0x606   :  { %v1351_v1 = vpop.f32.mrf.mxu0  ;;  %v1422_v2 = vpop.f32.mrf.mxu1 }
 0x607   :  { %v1426_v6 = vadd.f32 %v1351_v1, %v3545_v4  ;;  %v1440_v52 = vadd.f32 %v2895_v25, %v1422_v2  ;;  %v3548_v25 = vld [vmem:[#allocation21_spill] sm:$0xff] }
 0x608   :  { %v2237_v7 = vpop.f32.mrf.mxu1  ;;  %v1353_v10 = vpop.f32.mrf.mxu0 }
 0x609   :  { %v1818_v8 = vmul.f32 -1.442695, %v1426_v6  ;;  %v1433_v13 = vadd.f32 %v1353_v10, %v3546_v12 }
 0x60b   :  { %2368 = vpow2.f32 %v1818_v8  ;;  %v1819_v14 = vmul.f32 -1.442695, %v1433_v13 }
 0x60d   :  { %2370 = vpow2.f32 %v1819_v14 }
 0x618   :  { %v2369_v15 = vpop.eup %2368 }
 0x619   :  { %v1430_v17 = vadd.f32 1.0, %v2369_v15 }
 0x61a   :  { %v2371_v18 = vpop.eup %2370 }
 0x61b   :  { %2372 = vrcp.f32 %v1430_v17  ;;  %v1437_v51 = vadd.f32 1.0, %v2371_v18 }
 0x61d   :  { %2374 = vrcp.f32 %v1437_v51 }
 0x628   :  { %v2373_v47 = vpop.eup %2372 }
 0x629   :  { %v1441_v38 = vmul.f32 %v2373_v47, %v1440_v52 }
 0x62a   :  { %v2375_v4 = vpop.eup %2374 }
 0x62b   :  { %v1442_v1 = vadd.f32 %v1441_v38, %v3547_v63  ;;  %v1444_v6 = vsub.f32 1.0, %v2375_v4  ;;  %v1446_v10 = vmul.f32 %v2375_v4, %v3272_v19  ;;  %v3555_v38 = vld [vmem:[#allocation32_spill] sm:$0xff] }
 0x62d   :  { %2376 = vtanh.f32 %v1442_v1 }
 0x63a   :  { %v2377_v7 = vpop.eup %2376 }
 0x63b   :  { %v1445_v8 = vmul.f32 %v2377_v7, %v1444_v6 }
 0x63d   :  { %v3379_v12 = vadd.f32 %v1446_v10, %v1445_v8 }
 0x63f   :  { %1449 = vst [vmem:[#allocation10 + $0x28] sm:$0xff] %v3379_v12  ;;  %1519 = vmatmul.mubr.f32.vlgmr.msra.gmra.mxu0 %v3379_v12  ;;  %2271 = vmatmul.mubr.f32.vlgmr.msra.gmra.mxu1 %v3379_v12 }
 0x640   :  { %1624 = vmatpush1.msra.mxu0 %v3057_v62  ;;  %2274 = vmatpush3.msra.mxu1 %v3139_v60  ;;  %v3549_v62 = vld [vmem:[#allocation15_spill] sm:$0xff]  ;;  %v3550_v60 = vld [vmem:[#allocation20_spill] sm:$0xff] }
 0x641   :  { %1625 = vmatprep.subr.mxu0 %v3142_v44  ;;  %2275 = vmatprep.subr.mxu1 %v3515_v42  ;;  %v3551_v44 = vld [vmem:[#allocation18_spill] sm:$0xff] }
 0x642   :  { %1626 = vmatpush1.msra.mxu0 %v3146_v54  ;;  %2276 = vmatpush3.msra.mxu1 %v3282_v20 }
 0x643   :  { %1627 = vmatprep.subr.mxu0 %v3150_v0  ;;  %2277 = vmatprep.subr.mxu1 %v3515_v42 }
 0x644   :  { %1628 = vmatpush1.msra.mxu0 %v3154_v9  ;;  %2278 = vmatpush3.msra.mxu1 %v3288_v21  ;;  %v3552_v9 = vld [vmem:[#allocation30_spill] sm:$0xff] }
 0x645   :  { %1629 = vmatprep.subr.mxu0 %v3158_v40  ;;  %2279 = vmatprep.subr.mxu1 %v3515_v42 }
 0x646   :  { %1630 = vmatpush1.msra.mxu0 %v3162_v50  ;;  %2280 = vmatpush3.msra.mxu1 %v3294_v23  ;;  %v3556_v23 = vld [vmem:[#allocation33_spill] sm:$0xff] }
 0x647   :  { %1631 = vmatprep.subr.mxu0 %v3166_v27  ;;  %2281 = vmatprep.subr.mxu1 %v3515_v42 }
 0x648   :  { %1632 = vmatpush1.msra.mxu0 %v3170_v43  ;;  %2282 = vmatpush3.msra.mxu1 %v3300_v16 }
 0x649   :  { %1633 = vmatprep.subr.mxu0 %v3174_v28  ;;  %2283 = vmatprep.subr.mxu1 %v3515_v42  ;;  %v3553_v28 = vld [vmem:[#allocation31_spill] sm:$0xff] }
 0x64a   :  { %1634 = vmatpush1.msra.mxu0 %v3178_v22  ;;  %2284 = vmatpush3.msra.mxu1 %v3306_v39 }
 0x64b   :  { %1635 = vmatprep.subr.mxu0 %v3182_v29  ;;  %2285 = vmatprep.subr.mxu1 %v3515_v42 }
 0x64c   :  { %1636 = vmatpush1.msra.mxu0 %v3186_v11  ;;  %2286 = vmatpush3.msra.mxu1 %v3312_v46 }
 0x64d   :  { %1637 = vmatprep.subr.mxu0 %v3190_v30  ;;  %2287 = vmatprep.subr.mxu1 %v3515_v42 }
 0x64e   :  { %1638 = vmatpush1.msra.mxu0 %v3194_v26  ;;  %2288 = vmatpush3.msra.mxu1 %v3318_v49 }
 0x64f   :  { %1639 = vmatprep.subr.mxu0 %v3198_v31  ;;  %2289 = vmatprep.subr.mxu1 %v3515_v42 }
 0x650   :  { %1640 = vmatpush1.msra.mxu0 %v3202_v5  ;;  %2290 = vmatpush3.msra.mxu1 %v3324_v53 }
 0x651   :  { %1641 = vmatprep.subr.mxu0 %v3206_v32  ;;  %2291 = vmatprep.subr.mxu1 %v3515_v42 }
 0x652   :  { %1642 = vmatpush1.msra.mxu0 %v3210_v24  ;;  %2292 = vmatpush3.msra.mxu1 %v3330_v55 }
 0x653   :  { %1643 = vmatprep.subr.mxu0 %v3214_v33  ;;  %2293 = vmatprep.subr.mxu1 %v3515_v42  ;;  %v3554_v33 = vld [vmem:[#allocation39_spill] sm:$0xff] }
 0x654   :  { %1644 = vmatpush1.msra.mxu0 %v3218_v3  ;;  %2294 = vmatpush3.msra.mxu1 %v3336_v57 }
 0x655   :  { %1645 = vmatprep.subr.mxu0 %v3222_v34  ;;  %2295 = vmatprep.subr.mxu1 %v3515_v42 }
 0x656   :  { %1646 = vmatpush1.msra.mxu0 %v3226_v45  ;;  %2296 = vmatpush3.msra.mxu1 %v3342_v58 }
 0x657   :  { %1647 = vmatprep.subr.mxu0 %v3230_v35  ;;  %2297 = vmatprep.subr.mxu1 %v3515_v42 }
 0x658   :  { %1648 = vmatpush1.msra.mxu0 %v3234_v41  ;;  %2298 = vmatpush3.msra.mxu1 %v3348_v59 }
 0x659   :  { %1649 = vmatprep.subr.mxu0 %v3238_v36  ;;  %2299 = vmatprep.subr.mxu1 %v3515_v42 }
 0x65a   :  { %1650 = vmatpush1.msra.mxu0 %v3242_v48  ;;  %2300 = vmatpush3.msra.mxu1 %v3354_v61  ;;  %v3557_v61 = vld [vmem:[#allocation38_spill] sm:$0xff] }
 0x65b   :  { %1651 = vmatprep.subr.mxu0 %v3246_v37  ;;  %2301 = vmatprep.subr.mxu1 %v3515_v42 }
 0x65c   :  { %1652 = vmatpush1.msra.mxu0 %v3250_v56  ;;  %2302 = vmatpush3.msra.mxu1 %v3548_v25 }
 0x65d   :  { %1653 = vmatprep.subr.mxu0 %v3549_v62  ;;  %2303 = vmatprep.subr.mxu1 %v3515_v42 }
 0x65e   :  { %1654 = vmatpush1.msra.mxu0 %v3550_v60  ;;  %1687 = vmatprep.mubr.f32.mxu0 %v3515_v42 }
 0x65f   :  { %2304 = vmatpush3.msra.mxu1 %v3551_v44  ;;  %2305 = vmatprep.mubr.msk.f32.mxu1 %vm2541_vm0, %v3515_v42  ;;  %v2446_v42 = vld [vmem:[%s3469_s4] ss:$0 sm:$0xff]  ;;  %s2542_s4 = smov [#allocation10]  }
 0x660   :  { %s1794_s14 = sshll.u32 %s2542_s4, 4  ;;  %s1795_s14 = int_to_ptr.vmem [resolvable:$true] %s1794_s14 }
 0x661   :  { %s2507_s15 = scalar_lea.vmem %s1795_s14, 1024  ;;  %p2512_p2 = scmp.lt.s32.totalorder %s1795_s14, %s1795_s14 }
 0x662   :  { %p2508_p1 = scmp.ne.s32.totalorder %s1795_s14, %s2507_s15  ;;  %p2513_p3 = scmp.lt.s32.totalorder %s2507_s15, %s2507_s15 }
 0x664   :  { %p2514_p4 = por %p2513_p3, %p2512_p2 }
 0x666   :  { %p2515_p5 = pnand %p2514_p4, %p2508_p1 }
 0x6ff   :  { %v1520_v54 = vpop.f32.mrf.mxu0  ;;  %v1591_v0 = vpop.f32.mrf.mxu1 }
 0x700   :  { %v1595_v40 = vadd.f32 %v1520_v54, %v3552_v9  ;;  %v1609_v5 = vadd.f32 %v2446_v42, %v1591_v0 }
 0x701   :  { %v2272_v50 = vpop.f32.mrf.mxu1  ;;  %v1522_v43 = vpop.f32.mrf.mxu0 }
 0x702   :  { %v1820_v27 = vmul.f32 -1.442695, %v1595_v40  ;;  %v1602_v22 = vadd.f32 %v1522_v43, %v3553_v28 }
 0x704   :  { %2378 = vpow2.f32 %v1820_v27  ;;  %v1821_v29 = vmul.f32 -1.442695, %v1602_v22 }
 0x706   :  { %2380 = vpow2.f32 %v1821_v29 }
 0x711   :  { %v2379_v11 = vpop.eup %2378 }
 0x712   :  { %v1599_v30 = vadd.f32 1.0, %v2379_v11 }
 0x713   :  { %v2381_v26 = vpop.eup %2380 }
 0x714   :  { %2382 = vrcp.f32 %v1599_v30  ;;  %v1606_v31 = vadd.f32 1.0, %v2381_v26 }
 0x716   :  { %2384 = vrcp.f32 %v1606_v31 }
 0x721   :  { %v2383_v32 = vpop.eup %2382 }
 0x722   :  { %v1610_v24 = vmul.f32 %v2383_v32, %v1609_v5 }
 0x723   :  { %v2385_v34 = vpop.eup %2384 }
 0x724   :  { %v1611_v3 = vadd.f32 %v1610_v24, %v3554_v33  ;;  %v1613_v45 = vsub.f32 1.0, %v2385_v34  ;;  %v1615_v36 = vmul.f32 %v2385_v34, %v3379_v12 }
 0x726   :  { %2386 = vtanh.f32 %v1611_v3 }
 0x733   :  { %v2387_v35 = vpop.eup %2386 }
 0x734   :  { %v1614_v41 = vmul.f32 %v2387_v35, %v1613_v45 }
 0x736   :  { %v1616_v48 = vadd.f32 %v1615_v36, %v1614_v41 }
 0x738   :  { %1618 = vst [vmem:[#allocation10 + $0x30] sm:$0xff] %v1616_v48  ;;  %1688 = vmatmul.mubr.f32.vlgmr.msra.gmra.mxu0 %v1616_v48  ;;  %2306 = vmatmul.mubr.f32.vlgmr.msra.gmra.mxu1 %v1616_v48 }
 0x7f8   :  { %v1689_v37 = vpop.f32.mrf.mxu0  ;;  %v1760_v56 = vpop.f32.mrf.mxu1 }
 0x7f9   :  { %v1764_v47 = vadd.f32 %v1689_v37, %v3555_v38  ;;  %v1778_v57 = vadd.f32 %v2446_v42, %v1760_v56 }
 0x7fa   :  { %v2307_v19 = vpop.f32.mrf.mxu1  ;;  %v1691_v21 = vpop.f32.mrf.mxu0 }
 0x7fb   :  { %v1822_v20 = vmul.f32 -1.442695, %v1764_v47  ;;  %v1771_v16 = vadd.f32 %v1691_v21, %v3556_v23 }
 0x7fd   :  { %2388 = vpow2.f32 %v1822_v20  ;;  %v1823_v39 = vmul.f32 -1.442695, %v1771_v16 }
 0x7ff   :  { %2390 = vpow2.f32 %v1823_v39 }
 0x80a   :  { %v2389_v46 = vpop.eup %2388 }
 0x80b   :  { %v1768_v49 = vadd.f32 1.0, %v2389_v46 }
 0x80c   :  { %v2391_v53 = vpop.eup %2390 }
 0x80d   :  { %2392 = vrcp.f32 %v1768_v49  ;;  %v1775_v55 = vadd.f32 1.0, %v2391_v53 }
 0x80f   :  { %2394 = vrcp.f32 %v1775_v55 }
 0x81a   :  { %v2393_v58 = vpop.eup %2392 }
 0x81b   :  { %v1779_v59 = vmul.f32 %v2393_v58, %v1778_v57 }
 0x81c   :  { %v2395_v51 = vpop.eup %2394 }
 0x81d   :  { %v1780_v63 = vadd.f32 %v1779_v59, %v3557_v61  ;;  %v1782_v2 = vsub.f32 1.0, %v2395_v51  ;;  %v1784_v15 = vmul.f32 %v2395_v51, %v1616_v48 }
 0x81f   :  { %2396 = vtanh.f32 %v1780_v63 }
 0x82c   :  { %v2397_v13 = vpop.eup %2396 }
 0x82d   :  { %v1783_v14 = vmul.f32 %v2397_v13, %v1782_v2 }
 0x82f   :  { %v1785_v17 = vadd.f32 %v1784_v15, %v1783_v14 }
 0x831   :  { %1787 = vst [vmem:[#allocation10 + $0x38] sm:$0xff] %v1785_v17 }
 0x832   :  { %2518 = shalt.err (!%p2515_p5)
}
 0x833   :  { %1800 = dma.vmem_to_hbm [thread:$0]  %s1795_s14, 1024, %s3470_s5, [#allocation6], %s2537_s28, %s2537_s28, %s2538_s29  }
 0x834   :  { %2531 = dma.done.wait [#allocation6], 1024  }
 0x835   :  { %2532 = vsyncadd [#allocation6], 4294966272 }
 0x836   :  { %1804 = vsyncpa [#allocation5], 1 }
 0x837   :  { %1805 = vsyncpa [#allocation8], 1 }
 0x838   :  { %1806 = vsyncpa [#allocation6], 1 }

</bundles_post_ra>
